<compile_context>
chip_gen: v5e
topology: v5e:2x2
jax: 0.10.0
libtpu: 0.0.40
codegen_flags: <defaults>
</compile_context>

<pallas_src>
import functools
from typing import NamedTuple

import jax
import jax.numpy as jnp
from jax.experimental import pallas as pl
from jax.experimental.pallas import tpu as pltpu

_LANE = 128
_COMPUTE_DTYPE = jnp.bfloat16   # MXU operand dtype (accumulation stays f32)
_FEAT_DTYPE = jnp.bfloat16      # storage dtype for intermediate feature maps


def _round_up(x, m):
    return ((x + m - 1) // m) * m


def _pick_tm(m):
    # Largest row tile that still leaves >= 2 grid steps (v7x has 2 TCs and
    # the grid is sharded across them via dimension_semantics=("parallel",)).
    for tm in (1024, 512, 256):
        if m >= 2 * tm:
            return tm
    return 128


# ----------------------------------------------------------------------------
# Pallas GEMM kernel: the hot path for every conv / deform-conv in STDF.
# ----------------------------------------------------------------------------
def pallas_gemm(x, wmat, b2, n_out, act="none", out_dtype=jnp.float32):
    """act(x @ wmat + b2)[:, :n_out] with a tiled Pallas TPU kernel.

    x    : (M, K)      im2col patches (bf16)
    wmat : (K, Npad)   lane-padded weight, Npad % 128 == 0 (bf16)
    b2   : (1, Npad)   lane-padded bias (f32)
    """
    M, K = x.shape
    Kw, Npad = wmat.shape
    assert K == Kw and Npad % _LANE == 0
    TM = _pick_tm(M)
    Mpad = _round_up(M, TM)
    if Mpad != M:                      # only for ragged last tiles (rare)
        x = jnp.pad(x, ((0, Mpad - M), (0, 0)))
    grid = (Mpad // TM,)

    def kernel(x_ref, w_ref, b_ref, o_ref):
        acc = jnp.dot(x_ref[...], w_ref[...],
                      preferred_element_type=jnp.float32)
        acc = acc + b_ref[...]
        if act == "relu":
            acc = jnp.maximum(acc, 0.0)
        o_ref[...] = acc.astype(o_ref.dtype)

    out_itemsize = jnp.dtype(out_dtype).itemsize
    bytes_accessed = (Mpad * K * x.dtype.itemsize
                      + K * Npad * wmat.dtype.itemsize
                      + Npad * 4 + Mpad * Npad * out_itemsize)
    out = pl.pallas_call(
        kernel,
        out_shape=jax.ShapeDtypeStruct((Mpad, Npad), out_dtype),
        grid=grid,
        in_specs=[
            pl.BlockSpec((TM, K), lambda i: (i, 0)),
            pl.BlockSpec((K, Npad), lambda i: (0, 0)),   # resident across grid
            pl.BlockSpec((1, Npad), lambda i: (0, 0)),   # resident across grid
        ],
        out_specs=pl.BlockSpec((TM, Npad), lambda i: (i, 0)),
        compiler_params=pltpu.CompilerParams(
            dimension_semantics=("parallel",)),
        cost_estimate=pl.CostEstimate(
            flops=2 * Mpad * K * Npad,
            transcendentals=0,
            bytes_accessed=bytes_accessed),
    )(x, wmat, b2)
    return out[:M, :n_out]


# ----------------------------------------------------------------------------
# One-time parameter preparation (weight re-layout hoisted out of forward)
# ----------------------------------------------------------------------------
class ConvMeta(NamedTuple):
    cout: int
    cin: int
    kh: int
    kw: int


def _prep_gemm(w2d, b):
    """w2d: (Cout, K) flattened weight -> lane-padded bf16 (K, Npad) + f32 bias."""
    cout, K = w2d.shape
    npad = _round_up(cout, _LANE)
    wmat = jnp.zeros((K, npad), _COMPUTE_DTYPE)
    wmat = wmat.at[:, :cout].set(w2d.T.astype(_COMPUTE_DTYPE))
    b2 = jnp.zeros((1, npad), jnp.float32)
    b2 = b2.at[:, :cout].set(b.astype(jnp.float32).reshape(1, cout))
    return wmat, b2


def prepare_stdf_params(params):
    """Transpose, lane-pad N to 128 and cast weights to bf16 once.

    ConvTranspose2d(4, stride=2, padding=1) weights ("*_t") are split into the
    four sub-pixel 2x2 stride-1 convolutions used by conv_transpose2d below.
    """
    arrays, meta = {}, {}
    for name, (w, b) in params.items():
        if name.endswith("_t"):
            cin, cout, kh, kw = w.shape
            assert (kh, kw) == (4, 4)
            phases = {}
            for r, h_taps in ((0, (3, 1)), (1, (2, 0))):
                for s, w_taps in ((0, (3, 1)), (1, (2, 0))):
                    wsub = w[:, :, jnp.array(h_taps), :]
                    wsub = wsub[:, :, :, jnp.array(w_taps)]
                    wsub = wsub.transpose(1, 0, 2, 3)       # (Cout, Cin, 2, 2)
                    phases[f"{r}{s}"] = _prep_gemm(
                        wsub.reshape(cout, cin * 4), b)
            arrays[name] = phases
            meta[name] = ConvMeta(cout, cin, 2, 2)
        else:
            cout, cin, kh, kw = w.shape
            arrays[name] = _prep_gemm(w.reshape(cout, cin * kh * kw), b)
            meta[name] = ConvMeta(cout, cin, kh, kw)
    return arrays, meta


# ----------------------------------------------------------------------------
# Conv helpers (im2col glue in JAX, GEMM in Pallas)
# ----------------------------------------------------------------------------
def conv2d(x, wb, m, stride=1, padding=1, act="relu", out_dtype=_FEAT_DTYPE):
    """NCHW conv matching nn.Conv2d; wb = (wmat, b2) prepared by _prep_gemm."""
    # TODO(synk): patch extraction is still im2col in JAX; fusing it into the
    # Pallas kernel (halo-window BlockSpecs, kh*kw reduction axis) would remove
    # the kh*kw HBM expansion entirely.
    wmat, b2 = wb
    N, C, H, W = x.shape
    assert C == m.cin
    if isinstance(padding, int):
        pad_t = pad_b = pad_l = pad_r = padding
    else:
        (pad_t, pad_b), (pad_l, pad_r) = padding
    xp = jnp.pad(x, ((0, 0), (0, 0), (pad_t, pad_b), (pad_l, pad_r)))
    xp = xp.astype(_COMPUTE_DTYPE)
    Hp, Wp = H + pad_t + pad_b, W + pad_l + pad_r
    Ho = (Hp - m.kh) // stride + 1
    Wo = (Wp - m.kw) // stride + 1
    patches = []
    for i in range(m.kh):
        for j in range(m.kw):
            patches.append(
                xp[:, :, i:i + stride * Ho:stride, j:j + stride * Wo:stride])
    # (N, C, kh*kw, Ho, Wo) -> (N*Ho*Wo, C*kh*kw); inner K order = (c, kh, kw)
    patches = jnp.stack(patches, axis=2)
    cols = patches.transpose(0, 3, 4, 1, 2).reshape(
        N * Ho * Wo, C * m.kh * m.kw)
    y = pallas_gemm(cols, wmat, b2, m.cout, act=act, out_dtype=out_dtype)
    return y.reshape(N, Ho, Wo, m.cout).transpose(0, 3, 1, 2)


def conv_transpose2d(x, phases, m, act="relu"):
    """ConvTranspose2d(k=4, stride=2, padding=1) via sub-pixel decomposition:
    four 2x2 stride-1 convs (one per output phase), then interleave."""
    N, C, H, W = x.shape
    assert C == m.cin
    rows = []
    for r in (0, 1):
        phase_cols = []
        for s in (0, 1):
            wb = phases[f"{r}{s}"]
            pads = ((1, 0) if r == 0 else (0, 1),
                    (1, 0) if s == 0 else (0, 1))
            phase_cols.append(conv2d(x, wb, m, stride=1, padding=pads, act=act))
        rows.append(jnp.stack(phase_cols, axis=0))
    stacked = jnp.stack(rows, axis=0)            # (r, s, N, Cout, H, W)
    out = stacked.transpose(2, 3, 4, 0, 5, 1).reshape(
        N, m.cout, 2 * H, 2 * W)                 # out[..., 2u+r, 2v+s]
    return out


# ----------------------------------------------------------------------------
# Modulated deformable conv (DCNv2), deformable_groups == in_nc
# ----------------------------------------------------------------------------
def modulated_deform_conv(x, offset, mask, wb, m, pad=1):
    """x:(N,Cin,H,W), offset:(N,Cin*2*KK,H,W), mask:(N,Cin*KK,H,W) sigmoid'ed.
    Output = relu(dcnv2(x) + bias) via the Pallas GEMM."""
    wmat, b2 = wb
    N, Cin, H, W = x.shape
    assert Cin == m.cin
    KK = m.kh * m.kw

    off = offset.reshape(N, Cin, KK, 2, H, W)
    off_y = off[:, :, :, 0]
    off_x = off[:, :, :, 1]
    msk = mask.reshape(N, Cin, KK, H, W)

    ki = jnp.repeat(jnp.arange(m.kh), m.kw).astype(jnp.float32)   # (KK,)
    kj = jnp.tile(jnp.arange(m.kw), m.kh).astype(jnp.float32)
    hs = jnp.arange(H, dtype=jnp.float32)
    ws = jnp.arange(W, dtype=jnp.float32)

    y = (off_y + (hs - pad)[None, None, None, :, None]
         + ki[None, None, :, None, None])
    xc = (off_x + (ws - pad)[None, None, None, None, :]
          + kj[None, None, :, None, None])

    # TODO(synk): the data-dependent bilinear gather stays in plain JAX (no
    # rectangular-BlockSpec equivalent); it is a single batched gather for all
    # four corners instead of four separate take_along_axis calls.
    y0f = jnp.floor(y)
    x0f = jnp.floor(xc)
    y0 = y0f.astype(jnp.int32)
    x0 = x0f.astype(jnp.int32)
    ly = y - y0f
    lx = xc - x0f
    hy = 1.0 - ly
    hx = 1.0 - lx

    ys = jnp.stack([y0, y0, y0 + 1, y0 + 1], axis=0)      # (4,N,Cin,KK,H,W)
    xs = jnp.stack([x0, x0 + 1, x0, x0 + 1], axis=0)
    wts = jnp.stack([hy * hx, hy * lx, ly * hx, ly * lx], axis=0)
    valid = (ys >= 0) & (ys < H) & (xs >= 0) & (xs < W)
    idx = jnp.clip(ys, 0, H - 1) * W + jnp.clip(xs, 0, W - 1)

    xf = x.astype(jnp.float32).reshape(N, Cin, H * W)
    idx_flat = idx.transpose(1, 2, 0, 3, 4, 5).reshape(N, Cin, 4 * KK * H * W)
    g = jnp.take_along_axis(xf, idx_flat, axis=2)
    g = g.reshape(N, Cin, 4, KK, H, W).transpose(2, 0, 1, 3, 4, 5)
    val = jnp.sum(jnp.where(valid, g * wts, 0.0), axis=0)  # (N,Cin,KK,H,W)

    # mask modulation fused into the cols construction feeding the GEMM.
    cols = ((val * msk).transpose(0, 3, 4, 1, 2)
            .reshape(N * H * W, Cin * KK).astype(_COMPUTE_DTYPE))
    out = pallas_gemm(cols, wmat, b2, m.cout, act="relu",
                      out_dtype=jnp.float32)
    return out.reshape(N, H, W, m.cout).transpose(0, 3, 1, 2)


# ----------------------------------------------------------------------------
# STDF parameters + forward
# ----------------------------------------------------------------------------
def init_stdf_params(key, in_nc, out_nc, nf, nb, base_ks=3, deform_ks=3):
    params = {}
    state = [key]

    def nk():
        state[0], sub = jax.random.split(state[0])
        return sub

    def conv_p(cout, cin, k):
        w = jax.random.normal(nk(), (cout, cin, k, k), jnp.float32) * 0.1
        b = jax.random.normal(nk(), (cout,), jnp.float32) * 0.1
        return w, b

    def convT_p(cin, cout, k):
        w = jax.random.normal(nk(), (cin, cout, k, k), jnp.float32) * 0.1
        b = jax.random.normal(nk(), (cout,), jnp.float32) * 0.1
        return w, b

    params["in_conv"] = conv_p(nf, in_nc, base_ks)
    for i in range(1, nb):
        params[f"dn_conv{i}_0"] = conv_p(nf, nf, base_ks)
        params[f"dn_conv{i}_1"] = conv_p(nf, nf, base_ks)
        params[f"up_conv{i}_0"] = conv_p(nf, 2 * nf, base_ks)
        params[f"up_conv{i}_t"] = convT_p(nf, nf, 4)
    params["tr_conv_0"] = conv_p(nf, nf, base_ks)
    params["tr_conv_1"] = conv_p(nf, nf, base_ks)
    params["tr_conv_t"] = convT_p(nf, nf, 4)
    params["out_conv"] = conv_p(nf, nf, base_ks)
    params["offset_mask"] = conv_p(in_nc * 3 * deform_ks ** 2, nf, base_ks)
    params["deform"] = conv_p(out_nc, in_nc, deform_ks)
    return params


def stdf_forward(arrays, inputs, *, meta, in_nc, nb, deform_ks=3):
    n_off_msk = deform_ks * deform_ks

    center = inputs[:, in_nc // 2:in_nc // 2 + 1, :, :]
    om_in = inputs - center

    def conv(name, x, stride=1, act="relu", out_dtype=_FEAT_DTYPE):
        return conv2d(x, arrays[name], meta[name], stride=stride,
                      padding=1, act=act, out_dtype=out_dtype)

    def convT(name, x):
        return conv_transpose2d(x, arrays[name], meta[name], act="relu")

    out_lst = [conv("in_conv", om_in)]
    for i in range(1, nb):
        h = conv(f"dn_conv{i}_0", out_lst[i - 1], stride=2)
        h = conv(f"dn_conv{i}_1", h)
        out_lst.append(h)

    out = conv("tr_conv_0", out_lst[-1], stride=2)
    out = conv("tr_conv_1", out)
    out = convT("tr_conv_t", out)

    for i in range(nb - 1, 0, -1):
        cat = jnp.concatenate([out, out_lst[i]], axis=1)
        out = conv(f"up_conv{i}_0", cat)
        out = convT(f"up_conv{i}_t", out)

    out = conv("out_conv", out)
    # offsets need f32 precision; keep this conv's output in f32.
    off_msk = conv("offset_mask", out, act="none", out_dtype=jnp.float32)

    off = off_msk[:, :in_nc * 2 * n_off_msk, :, :]
    msk = jax.nn.sigmoid(off_msk[:, in_nc * 2 * n_off_msk:, :, :])

    fused_feat = modulated_deform_conv(
        inputs, off, msk, arrays["deform"], meta["deform"],
        pad=deform_ks // 2)
    return fused_feat


# ----------------------------------------------------------------------------
if __name__ == "__main__":
    in_nc, out_nc, nf, nb = 4, 8, 8, 2
    N, H, W = 2, 16, 16

    key = jax.random.PRNGKey(0)
    k_par, k_inp = jax.random.split(key)
    params = init_stdf_params(k_par, in_nc, out_nc, nf, nb)
    arrays, meta = prepare_stdf_params(params)     # one-time weight re-layout
    inputs = jax.random.normal(k_inp, (N, in_nc, H, W), jnp.float32)

    fwd = jax.jit(functools.partial(
        stdf_forward, meta=meta, in_nc=in_nc, nb=nb, deform_ks=3))
    out = fwd(arrays, inputs)
    out = jax.block_until_ready(out)

    assert out.shape == (N, out_nc, H, W), out.shape
    assert bool(jnp.all(jnp.isfinite(out)))
    print("KERNEL_OK")
</pallas_src>

<mosaic_0001>
module attributes {stable_mosaic.version = 11 : i64} {
  func.func @kernel(%arg0: i32, %arg1: memref<256x36xbf16, #tpu.memory_space<vmem>>, %arg2: memref<36x128xbf16, #tpu.memory_space<vmem>>, %arg3: memref<1x128xf32, #tpu.memory_space<vmem>>, %arg4: memref<256x128xbf16, #tpu.memory_space<vmem>>) attributes {dimension_semantics = [#tpu.dimension_semantics<parallel>], iteration_bounds = array<i64: 2>, scalar_prefetch = 0 : i64, scratch_operands = 0 : i64, tpu.core_type = #tpu.core_type<tc>, window_params = [{transform_indices = @transform_0, window_bounds = array<i64: 256, 36>}, {pipeline_mode = #tpu.pipeline_mode<synchronous>, transform_indices = @transform_1, window_bounds = array<i64: 36, 128>}, {pipeline_mode = #tpu.pipeline_mode<synchronous>, transform_indices = @transform_2, window_bounds = array<i64: 1, 128>}, {transform_indices = @transform_3, window_bounds = array<i64: 256, 128>}]} {
    %c0 = arith.constant 0 : index
    %c0_0 = arith.constant 0 : index
    %0 = vector.load %arg1[%c0, %c0_0] : memref<256x36xbf16, #tpu.memory_space<vmem>>, vector<256x36xbf16>
    %c0_1 = arith.constant 0 : index
    %c0_2 = arith.constant 0 : index
    %1 = vector.load %arg2[%c0_1, %c0_2] : memref<36x128xbf16, #tpu.memory_space<vmem>>, vector<36x128xbf16>
    %cst = arith.constant dense<0.000000e+00> : vector<256x128xf32>
    %2 = tpu.matmul %0, %1, %cst {dimension_numbers = #tpu.dot_dimension_numbers<[1], [0], [0], [1], [0, 0, 1, 1], [], []>} : vector<256x36xbf16>, vector<36x128xbf16>, vector<256x128xf32> -> vector<256x128xf32>
    %c0_3 = arith.constant 0 : index
    %c0_4 = arith.constant 0 : index
    %3 = vector.load %arg3[%c0_3, %c0_4] : memref<1x128xf32, #tpu.memory_space<vmem>>, vector<1x128xf32>
    %4 = vector.broadcast %3 : vector<1x128xf32> to vector<256x128xf32>
    %5 = arith.addf %2, %4 : vector<256x128xf32>
    %cst_5 = arith.constant 0.000000e+00 : f32
    %6 = vector.broadcast %cst_5 : f32 to vector<256x128xf32>
    %7 = arith.maximumf %5, %6 : vector<256x128xf32>
    %8 = arith.truncf %7 : vector<256x128xf32> to vector<256x128xbf16>
    %c0_6 = arith.constant 0 : index
    %c0_7 = arith.constant 0 : index
    %9 = vector.load %arg4[%c0_6, %c0_7] : memref<256x128xbf16, #tpu.memory_space<vmem>>, vector<256x128xbf16>
    tpu.vector_store %arg4[%c0_6, %c0_7], %8 {strides = array<i32>} : memref<256x128xbf16, #tpu.memory_space<vmem>>, vector<256x128xbf16>,
    return
  }
  func.func @transform_0(%arg0: i32) -> (i32, i32) {
    %c0_i32 = arith.constant 0 : i32
    %c0_i32_0 = arith.constant 0 : i32
    return %arg0, %c0_i32 : i32, i32
  }
  func.func @transform_1(%arg0: i32) -> (i32, i32) {
    %c0_i32 = arith.constant 0 : i32
    %c0_i32_0 = arith.constant 0 : i32
    %c0_i32_1 = arith.constant 0 : i32
    return %c0_i32, %c0_i32_0 : i32, i32
  }
  func.func @transform_2(%arg0: i32) -> (i32, i32) {
    %c0_i32 = arith.constant 0 : i32
    %c0_i32_0 = arith.constant 0 : i32
    %c0_i32_1 = arith.constant 0 : i32
    return %c0_i32, %c0_i32_0 : i32, i32
  }
  func.func @transform_3(%arg0: i32) -> (i32, i32) {
    %c0_i32 = arith.constant 0 : i32
    %c0_i32_0 = arith.constant 0 : i32
    return %arg0, %c0_i32 : i32, i32
  }
}

module attributes {stable_mosaic.version = 11 : i64} {
  func.func @kernel(%arg0: i32, %arg1: memref<128x72xbf16, #tpu.memory_space<vmem>>, %arg2: memref<72x128xbf16, #tpu.memory_space<vmem>>, %arg3: memref<1x128xf32, #tpu.memory_space<vmem>>, %arg4: memref<128x128xbf16, #tpu.memory_space<vmem>>) attributes {dimension_semantics = [#tpu.dimension_semantics<parallel>], iteration_bounds = array<i64: 1>, scalar_prefetch = 0 : i64, scratch_operands = 0 : i64, tpu.core_type = #tpu.core_type<tc>, window_params = [{transform_indices = @transform_0, window_bounds = array<i64: 128, 72>}, {pipeline_mode = #tpu.pipeline_mode<synchronous>, transform_indices = @transform_1, window_bounds = array<i64: 72, 128>}, {pipeline_mode = #tpu.pipeline_mode<synchronous>, transform_indices = @transform_2, window_bounds = array<i64: 1, 128>}, {transform_indices = @transform_3, window_bounds = array<i64: 128, 128>}]} {
    %c0 = arith.constant 0 : index
    %c0_0 = arith.constant 0 : index
    %0 = vector.load %arg1[%c0, %c0_0] : memref<128x72xbf16, #tpu.memory_space<vmem>>, vector<128x72xbf16>
    %c0_1 = arith.constant 0 : index
    %c0_2 = arith.constant 0 : index
    %1 = vector.load %arg2[%c0_1, %c0_2] : memref<72x128xbf16, #tpu.memory_space<vmem>>, vector<72x128xbf16>
    %cst = arith.constant dense<0.000000e+00> : vector<128x128xf32>
    %2 = tpu.matmul %0, %1, %cst {dimension_numbers = #tpu.dot_dimension_numbers<[1], [0], [0], [1], [0, 0, 1, 1], [], []>} : vector<128x72xbf16>, vector<72x128xbf16>, vector<128x128xf32> -> vector<128x128xf32>
    %c0_3 = arith.constant 0 : index
    %c0_4 = arith.constant 0 : index
    %3 = vector.load %arg3[%c0_3, %c0_4] : memref<1x128xf32, #tpu.memory_space<vmem>>, vector<1x128xf32>
    %4 = vector.broadcast %3 : vector<1x128xf32> to vector<128x128xf32>
    %5 = arith.addf %2, %4 : vector<128x128xf32>
    %cst_5 = arith.constant 0.000000e+00 : f32
    %6 = vector.broadcast %cst_5 : f32 to vector<128x128xf32>
    %7 = arith.maximumf %5, %6 : vector<128x128xf32>
    %8 = arith.truncf %7 : vector<128x128xf32> to vector<128x128xbf16>
    %c0_6 = arith.constant 0 : index
    %c0_7 = arith.constant 0 : index
    %9 = vector.load %arg4[%c0_6, %c0_7] : memref<128x128xbf16, #tpu.memory_space<vmem>>, vector<128x128xbf16>
    tpu.vector_store %arg4[%c0_6, %c0_7], %8 {strides = array<i32>} : memref<128x128xbf16, #tpu.memory_space<vmem>>, vector<128x128xbf16>,
    return
  }
  func.func @transform_0(%arg0: i32) -> (i32, i32) {
    %c0_i32 = arith.constant 0 : i32
    %c0_i32_0 = arith.constant 0 : i32
    return %arg0, %c0_i32 : i32, i32
  }
  func.func @transform_1(%arg0: i32) -> (i32, i32) {
    %c0_i32 = arith.constant 0 : i32
    %c0_i32_0 = arith.constant 0 : i32
    %c0_i32_1 = arith.constant 0 : i32
    return %c0_i32, %c0_i32_0 : i32, i32
  }
  func.func @transform_2(%arg0: i32) -> (i32, i32) {
    %c0_i32 = arith.constant 0 : i32
    %c0_i32_0 = arith.constant 0 : i32
    %c0_i32_1 = arith.constant 0 : i32
    return %c0_i32, %c0_i32_0 : i32, i32
  }
  func.func @transform_3(%arg0: i32) -> (i32, i32) {
    %c0_i32 = arith.constant 0 : i32
    %c0_i32_0 = arith.constant 0 : i32
    return %arg0, %c0_i32 : i32, i32
  }
}

module attributes {stable_mosaic.version = 11 : i64} {
  func.func @kernel(%arg0: i32, %arg1: memref<128x32xbf16, #tpu.memory_space<vmem>>, %arg2: memref<32x128xbf16, #tpu.memory_space<vmem>>, %arg3: memref<1x128xf32, #tpu.memory_space<vmem>>, %arg4: memref<128x128xbf16, #tpu.memory_space<vmem>>) attributes {dimension_semantics = [#tpu.dimension_semantics<parallel>], iteration_bounds = array<i64: 1>, scalar_prefetch = 0 : i64, scratch_operands = 0 : i64, tpu.core_type = #tpu.core_type<tc>, window_params = [{transform_indices = @transform_0, window_bounds = array<i64: 128, 32>}, {pipeline_mode = #tpu.pipeline_mode<synchronous>, transform_indices = @transform_1, window_bounds = array<i64: 32, 128>}, {pipeline_mode = #tpu.pipeline_mode<synchronous>, transform_indices = @transform_2, window_bounds = array<i64: 1, 128>}, {transform_indices = @transform_3, window_bounds = array<i64: 128, 128>}]} {
    %c0 = arith.constant 0 : index
    %c0_0 = arith.constant 0 : index
    %0 = vector.load %arg1[%c0, %c0_0] : memref<128x32xbf16, #tpu.memory_space<vmem>>, vector<128x32xbf16>
    %c0_1 = arith.constant 0 : index
    %c0_2 = arith.constant 0 : index
    %1 = vector.load %arg2[%c0_1, %c0_2] : memref<32x128xbf16, #tpu.memory_space<vmem>>, vector<32x128xbf16>
    %cst = arith.constant dense<0.000000e+00> : vector<128x128xf32>
    %2 = tpu.matmul %0, %1, %cst {dimension_numbers = #tpu.dot_dimension_numbers<[1], [0], [0], [1], [0, 0, 1, 1], [], []>} : vector<128x32xbf16>, vector<32x128xbf16>, vector<128x128xf32> -> vector<128x128xf32>
    %c0_3 = arith.constant 0 : index
    %c0_4 = arith.constant 0 : index
    %3 = vector.load %arg3[%c0_3, %c0_4] : memref<1x128xf32, #tpu.memory_space<vmem>>, vector<1x128xf32>
    %4 = vector.broadcast %3 : vector<1x128xf32> to vector<128x128xf32>
    %5 = arith.addf %2, %4 : vector<128x128xf32>
    %cst_5 = arith.constant 0.000000e+00 : f32
    %6 = vector.broadcast %cst_5 : f32 to vector<128x128xf32>
    %7 = arith.maximumf %5, %6 : vector<128x128xf32>
    %8 = arith.truncf %7 : vector<128x128xf32> to vector<128x128xbf16>
    %c0_6 = arith.constant 0 : index
    %c0_7 = arith.constant 0 : index
    %9 = vector.load %arg4[%c0_6, %c0_7] : memref<128x128xbf16, #tpu.memory_space<vmem>>, vector<128x128xbf16>
    tpu.vector_store %arg4[%c0_6, %c0_7], %8 {strides = array<i32>} : memref<128x128xbf16, #tpu.memory_space<vmem>>, vector<128x128xbf16>,
    return
  }
  func.func @transform_0(%arg0: i32) -> (i32, i32) {
    %c0_i32 = arith.constant 0 : i32
    %c0_i32_0 = arith.constant 0 : i32
    return %arg0, %c0_i32 : i32, i32
  }
  func.func @transform_1(%arg0: i32) -> (i32, i32) {
    %c0_i32 = arith.constant 0 : i32
    %c0_i32_0 = arith.constant 0 : i32
    %c0_i32_1 = arith.constant 0 : i32
    return %c0_i32, %c0_i32_0 : i32, i32
  }
  func.func @transform_2(%arg0: i32) -> (i32, i32) {
    %c0_i32 = arith.constant 0 : i32
    %c0_i32_0 = arith.constant 0 : i32
    %c0_i32_1 = arith.constant 0 : i32
    return %c0_i32, %c0_i32_0 : i32, i32
  }
  func.func @transform_3(%arg0: i32) -> (i32, i32) {
    %c0_i32 = arith.constant 0 : i32
    %c0_i32_0 = arith.constant 0 : i32
    return %arg0, %c0_i32 : i32, i32
  }
}

module attributes {stable_mosaic.version = 11 : i64} {
  func.func @kernel(%arg0: i32, %arg1: memref<128x144xbf16, #tpu.memory_space<vmem>>, %arg2: memref<144x128xbf16, #tpu.memory_space<vmem>>, %arg3: memref<1x128xf32, #tpu.memory_space<vmem>>, %arg4: memref<128x128xbf16, #tpu.memory_space<vmem>>) attributes {dimension_semantics = [#tpu.dimension_semantics<parallel>], iteration_bounds = array<i64: 1>, scalar_prefetch = 0 : i64, scratch_operands = 0 : i64, tpu.core_type = #tpu.core_type<tc>, window_params = [{transform_indices = @transform_0, window_bounds = array<i64: 128, 144>}, {pipeline_mode = #tpu.pipeline_mode<synchronous>, transform_indices = @transform_1, window_bounds = array<i64: 144, 128>}, {pipeline_mode = #tpu.pipeline_mode<synchronous>, transform_indices = @transform_2, window_bounds = array<i64: 1, 128>}, {transform_indices = @transform_3, window_bounds = array<i64: 128, 128>}]} {
    %c0 = arith.constant 0 : index
    %c0_0 = arith.constant 0 : index
    %0 = vector.load %arg1[%c0, %c0_0] : memref<128x144xbf16, #tpu.memory_space<vmem>>, vector<128x144xbf16>
    %c0_1 = arith.constant 0 : index
    %c0_2 = arith.constant 0 : index
    %1 = vector.load %arg2[%c0_1, %c0_2] : memref<144x128xbf16, #tpu.memory_space<vmem>>, vector<144x128xbf16>
    %cst = arith.constant dense<0.000000e+00> : vector<128x128xf32>
    %2 = tpu.matmul %0, %1, %cst {dimension_numbers = #tpu.dot_dimension_numbers<[1], [0], [0], [1], [0, 0, 1, 1], [], []>} : vector<128x144xbf16>, vector<144x128xbf16>, vector<128x128xf32> -> vector<128x128xf32>
    %c0_3 = arith.constant 0 : index
    %c0_4 = arith.constant 0 : index
    %3 = vector.load %arg3[%c0_3, %c0_4] : memref<1x128xf32, #tpu.memory_space<vmem>>, vector<1x128xf32>
    %4 = vector.broadcast %3 : vector<1x128xf32> to vector<128x128xf32>
    %5 = arith.addf %2, %4 : vector<128x128xf32>
    %cst_5 = arith.constant 0.000000e+00 : f32
    %6 = vector.broadcast %cst_5 : f32 to vector<128x128xf32>
    %7 = arith.maximumf %5, %6 : vector<128x128xf32>
    %8 = arith.truncf %7 : vector<128x128xf32> to vector<128x128xbf16>
    %c0_6 = arith.constant 0 : index
    %c0_7 = arith.constant 0 : index
    %9 = vector.load %arg4[%c0_6, %c0_7] : memref<128x128xbf16, #tpu.memory_space<vmem>>, vector<128x128xbf16>
    tpu.vector_store %arg4[%c0_6, %c0_7], %8 {strides = array<i32>} : memref<128x128xbf16, #tpu.memory_space<vmem>>, vector<128x128xbf16>,
    return
  }
  func.func @transform_0(%arg0: i32) -> (i32, i32) {
    %c0_i32 = arith.constant 0 : i32
    %c0_i32_0 = arith.constant 0 : i32
    return %arg0, %c0_i32 : i32, i32
  }
  func.func @transform_1(%arg0: i32) -> (i32, i32) {
    %c0_i32 = arith.constant 0 : i32
    %c0_i32_0 = arith.constant 0 : i32
    %c0_i32_1 = arith.constant 0 : i32
    return %c0_i32, %c0_i32_0 : i32, i32
  }
  func.func @transform_2(%arg0: i32) -> (i32, i32) {
    %c0_i32 = arith.constant 0 : i32
    %c0_i32_0 = arith.constant 0 : i32
    %c0_i32_1 = arith.constant 0 : i32
    return %c0_i32, %c0_i32_0 : i32, i32
  }
  func.func @transform_3(%arg0: i32) -> (i32, i32) {
    %c0_i32 = arith.constant 0 : i32
    %c0_i32_0 = arith.constant 0 : i32
    return %arg0, %c0_i32 : i32, i32
  }
}

module attributes {stable_mosaic.version = 11 : i64} {
  func.func @kernel(%arg0: i32, %arg1: memref<256x72xbf16, #tpu.memory_space<vmem>>, %arg2: memref<72x128xbf16, #tpu.memory_space<vmem>>, %arg3: memref<1x128xf32, #tpu.memory_space<vmem>>, %arg4: memref<256x128xbf16, #tpu.memory_space<vmem>>) attributes {dimension_semantics = [#tpu.dimension_semantics<parallel>], iteration_bounds = array<i64: 2>, scalar_prefetch = 0 : i64, scratch_operands = 0 : i64, tpu.core_type = #tpu.core_type<tc>, window_params = [{transform_indices = @transform_0, window_bounds = array<i64: 256, 72>}, {pipeline_mode = #tpu.pipeline_mode<synchronous>, transform_indices = @transform_1, window_bounds = array<i64: 72, 128>}, {pipeline_mode = #tpu.pipeline_mode<synchronous>, transform_indices = @transform_2, window_bounds = array<i64: 1, 128>}, {transform_indices = @transform_3, window_bounds = array<i64: 256, 128>}]} {
    %c0 = arith.constant 0 : index
    %c0_0 = arith.constant 0 : index
    %0 = vector.load %arg1[%c0, %c0_0] : memref<256x72xbf16, #tpu.memory_space<vmem>>, vector<256x72xbf16>
    %c0_1 = arith.constant 0 : index
    %c0_2 = arith.constant 0 : index
    %1 = vector.load %arg2[%c0_1, %c0_2] : memref<72x128xbf16, #tpu.memory_space<vmem>>, vector<72x128xbf16>
    %cst = arith.constant dense<0.000000e+00> : vector<256x128xf32>
    %2 = tpu.matmul %0, %1, %cst {dimension_numbers = #tpu.dot_dimension_numbers<[1], [0], [0], [1], [0, 0, 1, 1], [], []>} : vector<256x72xbf16>, vector<72x128xbf16>, vector<256x128xf32> -> vector<256x128xf32>
    %c0_3 = arith.constant 0 : index
    %c0_4 = arith.constant 0 : index
    %3 = vector.load %arg3[%c0_3, %c0_4] : memref<1x128xf32, #tpu.memory_space<vmem>>, vector<1x128xf32>
    %4 = vector.broadcast %3 : vector<1x128xf32> to vector<256x128xf32>
    %5 = arith.addf %2, %4 : vector<256x128xf32>
    %cst_5 = arith.constant 0.000000e+00 : f32
    %6 = vector.broadcast %cst_5 : f32 to vector<256x128xf32>
    %7 = arith.maximumf %5, %6 : vector<256x128xf32>
    %8 = arith.truncf %7 : vector<256x128xf32> to vector<256x128xbf16>
    %c0_6 = arith.constant 0 : index
    %c0_7 = arith.constant 0 : index
    %9 = vector.load %arg4[%c0_6, %c0_7] : memref<256x128xbf16, #tpu.memory_space<vmem>>, vector<256x128xbf16>
    tpu.vector_store %arg4[%c0_6, %c0_7], %8 {strides = array<i32>} : memref<256x128xbf16, #tpu.memory_space<vmem>>, vector<256x128xbf16>,
    return
  }
  func.func @transform_0(%arg0: i32) -> (i32, i32) {
    %c0_i32 = arith.constant 0 : i32
    %c0_i32_0 = arith.constant 0 : i32
    return %arg0, %c0_i32 : i32, i32
  }
  func.func @transform_1(%arg0: i32) -> (i32, i32) {
    %c0_i32 = arith.constant 0 : i32
    %c0_i32_0 = arith.constant 0 : i32
    %c0_i32_1 = arith.constant 0 : i32
    return %c0_i32, %c0_i32_0 : i32, i32
  }
  func.func @transform_2(%arg0: i32) -> (i32, i32) {
    %c0_i32 = arith.constant 0 : i32
    %c0_i32_0 = arith.constant 0 : i32
    %c0_i32_1 = arith.constant 0 : i32
    return %c0_i32, %c0_i32_0 : i32, i32
  }
  func.func @transform_3(%arg0: i32) -> (i32, i32) {
    %c0_i32 = arith.constant 0 : i32
    %c0_i32_0 = arith.constant 0 : i32
    return %arg0, %c0_i32 : i32, i32
  }
}

module attributes {stable_mosaic.version = 11 : i64} {
  func.func @kernel(%arg0: i32, %arg1: memref<256x72xbf16, #tpu.memory_space<vmem>>, %arg2: memref<72x128xbf16, #tpu.memory_space<vmem>>, %arg3: memref<1x128xf32, #tpu.memory_space<vmem>>, %arg4: memref<256x128xf32, #tpu.memory_space<vmem>>) attributes {dimension_semantics = [#tpu.dimension_semantics<parallel>], iteration_bounds = array<i64: 2>, scalar_prefetch = 0 : i64, scratch_operands = 0 : i64, tpu.core_type = #tpu.core_type<tc>, window_params = [{transform_indices = @transform_0, window_bounds = array<i64: 256, 72>}, {pipeline_mode = #tpu.pipeline_mode<synchronous>, transform_indices = @transform_1, window_bounds = array<i64: 72, 128>}, {pipeline_mode = #tpu.pipeline_mode<synchronous>, transform_indices = @transform_2, window_bounds = array<i64: 1, 128>}, {transform_indices = @transform_3, window_bounds = array<i64: 256, 128>}]} {
    %c0 = arith.constant 0 : index
    %c0_0 = arith.constant 0 : index
    %0 = vector.load %arg1[%c0, %c0_0] : memref<256x72xbf16, #tpu.memory_space<vmem>>, vector<256x72xbf16>
    %c0_1 = arith.constant 0 : index
    %c0_2 = arith.constant 0 : index
    %1 = vector.load %arg2[%c0_1, %c0_2] : memref<72x128xbf16, #tpu.memory_space<vmem>>, vector<72x128xbf16>
    %cst = arith.constant dense<0.000000e+00> : vector<256x128xf32>
    %2 = tpu.matmul %0, %1, %cst {dimension_numbers = #tpu.dot_dimension_numbers<[1], [0], [0], [1], [0, 0, 1, 1], [], []>} : vector<256x72xbf16>, vector<72x128xbf16>, vector<256x128xf32> -> vector<256x128xf32>
    %c0_3 = arith.constant 0 : index
    %c0_4 = arith.constant 0 : index
    %3 = vector.load %arg3[%c0_3, %c0_4] : memref<1x128xf32, #tpu.memory_space<vmem>>, vector<1x128xf32>
    %4 = vector.broadcast %3 : vector<1x128xf32> to vector<256x128xf32>
    %5 = arith.addf %2, %4 : vector<256x128xf32>
    %c0_5 = arith.constant 0 : index
    %c0_6 = arith.constant 0 : index
    %6 = vector.load %arg4[%c0_5, %c0_6] : memref<256x128xf32, #tpu.memory_space<vmem>>, vector<256x128xf32>
    tpu.vector_store %arg4[%c0_5, %c0_6], %5 {strides = array<i32>} : memref<256x128xf32, #tpu.memory_space<vmem>>, vector<256x128xf32>,
    return
  }
  func.func @transform_0(%arg0: i32) -> (i32, i32) {
    %c0_i32 = arith.constant 0 : i32
    %c0_i32_0 = arith.constant 0 : i32
    return %arg0, %c0_i32 : i32, i32
  }
  func.func @transform_1(%arg0: i32) -> (i32, i32) {
    %c0_i32 = arith.constant 0 : i32
    %c0_i32_0 = arith.constant 0 : i32
    %c0_i32_1 = arith.constant 0 : i32
    return %c0_i32, %c0_i32_0 : i32, i32
  }
  func.func @transform_2(%arg0: i32) -> (i32, i32) {
    %c0_i32 = arith.constant 0 : i32
    %c0_i32_0 = arith.constant 0 : i32
    %c0_i32_1 = arith.constant 0 : i32
    return %c0_i32, %c0_i32_0 : i32, i32
  }
  func.func @transform_3(%arg0: i32) -> (i32, i32) {
    %c0_i32 = arith.constant 0 : i32
    %c0_i32_0 = arith.constant 0 : i32
    return %arg0, %c0_i32 : i32, i32
  }
}

module attributes {stable_mosaic.version = 11 : i64} {
  func.func @kernel(%arg0: i32, %arg1: memref<256x36xbf16, #tpu.memory_space<vmem>>, %arg2: memref<36x128xbf16, #tpu.memory_space<vmem>>, %arg3: memref<1x128xf32, #tpu.memory_space<vmem>>, %arg4: memref<256x128xf32, #tpu.memory_space<vmem>>) attributes {dimension_semantics = [#tpu.dimension_semantics<parallel>], iteration_bounds = array<i64: 2>, scalar_prefetch = 0 : i64, scratch_operands = 0 : i64, tpu.core_type = #tpu.core_type<tc>, window_params = [{transform_indices = @transform_0, window_bounds = array<i64: 256, 36>}, {pipeline_mode = #tpu.pipeline_mode<synchronous>, transform_indices = @transform_1, window_bounds = array<i64: 36, 128>}, {pipeline_mode = #tpu.pipeline_mode<synchronous>, transform_indices = @transform_2, window_bounds = array<i64: 1, 128>}, {transform_indices = @transform_3, window_bounds = array<i64: 256, 128>}]} {
    %c0 = arith.constant 0 : index
    %c0_0 = arith.constant 0 : index
    %0 = vector.load %arg1[%c0, %c0_0] : memref<256x36xbf16, #tpu.memory_space<vmem>>, vector<256x36xbf16>
    %c0_1 = arith.constant 0 : index
    %c0_2 = arith.constant 0 : index
    %1 = vector.load %arg2[%c0_1, %c0_2] : memref<36x128xbf16, #tpu.memory_space<vmem>>, vector<36x128xbf16>
    %cst = arith.constant dense<0.000000e+00> : vector<256x128xf32>
    %2 = tpu.matmul %0, %1, %cst {dimension_numbers = #tpu.dot_dimension_numbers<[1], [0], [0], [1], [0, 0, 1, 1], [], []>} : vector<256x36xbf16>, vector<36x128xbf16>, vector<256x128xf32> -> vector<256x128xf32>
    %c0_3 = arith.constant 0 : index
    %c0_4 = arith.constant 0 : index
    %3 = vector.load %arg3[%c0_3, %c0_4] : memref<1x128xf32, #tpu.memory_space<vmem>>, vector<1x128xf32>
    %4 = vector.broadcast %3 : vector<1x128xf32> to vector<256x128xf32>
    %5 = arith.addf %2, %4 : vector<256x128xf32>
    %cst_5 = arith.constant 0.000000e+00 : f32
    %6 = vector.broadcast %cst_5 : f32 to vector<256x128xf32>
    %7 = arith.maximumf %5, %6 : vector<256x128xf32>
    %c0_6 = arith.constant 0 : index
    %c0_7 = arith.constant 0 : index
    %8 = vector.load %arg4[%c0_6, %c0_7] : memref<256x128xf32, #tpu.memory_space<vmem>>, vector<256x128xf32>
    tpu.vector_store %arg4[%c0_6, %c0_7], %7 {strides = array<i32>} : memref<256x128xf32, #tpu.memory_space<vmem>>, vector<256x128xf32>,
    return
  }
  func.func @transform_0(%arg0: i32) -> (i32, i32) {
    %c0_i32 = arith.constant 0 : i32
    %c0_i32_0 = arith.constant 0 : i32
    return %arg0, %c0_i32 : i32, i32
  }
  func.func @transform_1(%arg0: i32) -> (i32, i32) {
    %c0_i32 = arith.constant 0 : i32
    %c0_i32_0 = arith.constant 0 : i32
    %c0_i32_1 = arith.constant 0 : i32
    return %c0_i32, %c0_i32_0 : i32, i32
  }
  func.func @transform_2(%arg0: i32) -> (i32, i32) {
    %c0_i32 = arith.constant 0 : i32
    %c0_i32_0 = arith.constant 0 : i32
    %c0_i32_1 = arith.constant 0 : i32
    return %c0_i32, %c0_i32_0 : i32, i32
  }
  func.func @transform_3(%arg0: i32) -> (i32, i32) {
    %c0_i32 = arith.constant 0 : i32
    %c0_i32_0 = arith.constant 0 : i32
    return %arg0, %c0_i32 : i32, i32
  }
}

</mosaic_0001>

<bundles_post_ra>
// kernel: stdf_forward.17
= control target key start
LH: loop header
LB: loop body
LE: loop exit
PB: predicated region body
PF: predicated region fallthrough
CT: control target
= control target key end

     0   :  { %8 = vsyncpa [#allocation3], 0  ;;  %s1154_s0 = inlined_call_operand.vmem [shape: bf16[512,36], index: 0, kind: input, shape index: {}]   ;;  %s1155_s1 = inlined_call_operand.hbm [shape: bf16[36,128], index: 1, kind: input, shape index: {}]   ;;  %s1156_s2 = inlined_call_operand.hbm [shape: f32[1,128], index: 2, kind: input, shape index: {}]   ;;  %s1157_s3 = inlined_call_operand.vmem [shape: bf16[512,128], index: 3, kind: output, shape index: {}]  }
   0x1   :  { %9 = vsyncpa [#allocation5], 0  ;;  %s1016_s12 = smov 0  }
   0x2 LB: > { %s125_s15 = sshll.u32 %s1155_s1, 4  ;;  %s659_s16 = sadd.s32 4294967295, %s990_s12   ;;  %s990_s12 = sphi %s1016_s12, %s15_s12   ;;  %s126_s15 = int_to_ptr.hbm [resolvable:$true] %s125_s15 }
   0x3   : > { %p661_p0 = scmp.ge.s32.totalorder %s990_s12, 1  ;;  %p114_p1 = scmp.lt.s32.totalorder %s990_s12, 3 }
   0x4   : > { %p1027_p2 = scmp.eq.s32.totalorder %s659_s16, 0  ;;  %s992_s19 = smov [#allocation2]  }
   0x5   : > { %p1031_p3 = pnand %p661_p0, %p114_p1  ;;  %s127_s20 = sshll.u32 %s992_s19, 4  ;;  %s128_s20 = int_to_ptr.vmem [resolvable:$true] %s127_s20 }
   0x6   : > { %s140_s23 = sshll.u32 %s1156_s2, 4  ;;  %s993_s24 = smov [#allocation4]   ;;  %s141_s23 = int_to_ptr.hbm [resolvable:$true] %s140_s23 }
   0x7   : > { %p892_p4 = pneg %p1031_p3  ;;  %s142_s25 = sshll.u32 %s993_s24, 4  ;;  %s143_s25 = int_to_ptr.vmem [resolvable:$true] %s142_s25 }
   0x8   : > { %s994_s26 = smov 64   ;;  %s995_s27 = smov 4  }
   0x9   : > { %p893_p5 = pnand %p1027_p2, %p892_p4  ;;  %164 = sbr.rel (%p1031_p3) target bundleno = 231 (0xe7), region = 32 }
   0xb   : > { %895 = dma.hbm_to_vmem [thread:$0]  (!%p893_p5), %s126_s15, 320, %s128_s20, [#allocation3], %s994_s26, %s994_s26, %s995_s27  }
   0xc   : > { %898 = dma.hbm_to_vmem [thread:$0]  (!%p893_p5), %s141_s23, 16, %s143_s25, [#allocation5]  }
   0xe   : > { %981 = dma.done.wait (%p1027_p2), [#allocation3], 320  }
   0xf   : > { %983 = vsyncadd (%p1027_p2), [#allocation3], 4294966976 }
  0x10   : > { %985 = dma.done.wait (%p1027_p2), [#allocation5], 16  }
  0x11   : > { %987 = vsyncadd (%p1027_p2), [#allocation5], 4294967280  ;;  %s668_s28 = sshll.u32 %s659_s16, 5  ;;  %v243_v0 = vld [vmem:[#allocation2 + $0x10] sm:$0x3]  ;;  %vm392_vm0 = vcmask 1041408  }
  0x12   : > { %p195_p6 = scmp.lt.s32.totalorder %s668_s28, 63  ;;  %v337_v1 = vunpack.c.l.b16 %v243_v0  ;;  %v779_v4 = vld [vmem:[#allocation2 + $0x8] sm:$0xff]  ;;  %v778_v5 = vld [vmem:[#allocation2] sm:$0xff]  ;;  %vm343_vm1 = vcmask 293888   ;;  %v1094_v24 = vld [vmem:[#allocation4] ss:$0 sm:$0xff] }
  0x14   : > { %v340_v2 = vpack.c.b16 %v337_v1, %v337_v1  ;;  %s1161_s28 = smov (!%p195_p6, %s668_s28), 63 }
  0x15   : > { %s669_s29 = sshll.u32 %s1161_s28, 2 }
  0x16   : > { %v394_v3 = vsel %vm392_vm0, %v340_v2, 0  ;;  %s1060_s5 = scalar_lea.vmem %s1154_s0, %s669_s29  ;;  %s1105_s8 = scalar_lea.vmem %s1157_s3, %s669_s29 }
  0x17   : > { %401 = vmatpush.bf16.msra.mxu0 %v394_v3  ;;  %875 = vmatpush.bf16.msra.mxu1 %v394_v3  ;;  %v762_v6 = vld [vmem:[%s1060_s5] sm:$0xff]  ;;  %v763_v10 = vld [vmem:[%s1060_s5 + $0x8] sm:$0xff]  ;;  %v764_v14 = vld [vmem:[%s1060_s5 + $0x10] sm:$0xff] }
  0x18   : > { %876 = vmatpush.bf16.msra.mxu2 %v394_v3  ;;  %877 = vmatpush.bf16.msra.mxu3 %v394_v3  ;;  %v766_v7 = vld [vmem:[%s1060_s5 + $0x20] sm:$0xff]  ;;  %v767_v11 = vld [vmem:[%s1060_s5 + $0x28] sm:$0xff]  ;;  %v768_v15 = vld [vmem:[%s1060_s5 + $0x30] sm:$0xff] }
  0x19   : > { %v770_v8 = vld [vmem:[%s1060_s5 + $0x40] sm:$0xff]  ;;  %v771_v12 = vld [vmem:[%s1060_s5 + $0x48] sm:$0xff]  ;;  %v772_v16 = vld [vmem:[%s1060_s5 + $0x50] sm:$0xff] }
  0x1a   : > { %v774_v9 = vld [vmem:[%s1060_s5 + $0x60] sm:$0xff]  ;;  %v775_v13 = vld [vmem:[%s1060_s5 + $0x68] sm:$0xff]  ;;  %v776_v17 = vld [vmem:[%s1060_s5 + $0x70] sm:$0xff] }
  0x1b   : > { %402 = vmatpush.bf16.msra.mxu0 %v779_v4  ;;  %878 = vmatpush.bf16.msra.mxu1 %v779_v4  ;;  %v765_v18 = vld [vmem:[%s1060_s5 + $0x18] sm:$0xff] }
  0x1c   : > { %879 = vmatpush.bf16.msra.mxu2 %v779_v4  ;;  %880 = vmatpush.bf16.msra.mxu3 %v779_v4  ;;  %v769_v19 = vld [vmem:[%s1060_s5 + $0x38] sm:$0xff] }
  0x1d   : > { %v773_v20 = vld [vmem:[%s1060_s5 + $0x58] sm:$0xff] }
  0x1e   : > { %v777_v21 = vld [vmem:[%s1060_s5 + $0x78] sm:$0xff] }
  0x1f   : > { %403 = vmatpush.bf16.msra.mxu0 %v778_v5  ;;  %881 = vmatpush.bf16.msra.mxu1 %v778_v5 }
  0x20   : > { %882 = vmatpush.bf16.msra.mxu2 %v778_v5  ;;  %883 = vmatpush.bf16.msra.mxu3 %v778_v5 }
  0x22   : > { %744 = vmatmul.msk.bf16.vlgmr.msra.gmra.mxu0 %vm343_vm1, %v762_v6  ;;  %748 = vmatmul.msk.bf16.vlgmr.msra.gmra.mxu1 %vm343_vm1, %v766_v7 }
  0x23   : > { %752 = vmatmul.msk.bf16.vlgmr.msra.gmra.mxu2 %vm343_vm1, %v770_v8  ;;  %756 = vmatmul.msk.bf16.vlgmr.msra.gmra.mxu3 %vm343_vm1, %v774_v9 }
  0x32   : > { %745 = vmatmul.msk.bf16.gmra.mxu0 %vm343_vm1, %v763_v10  ;;  %749 = vmatmul.msk.bf16.gmra.mxu1 %vm343_vm1, %v767_v11 }
  0x33   : > { %753 = vmatmul.msk.bf16.gmra.mxu2 %vm343_vm1, %v771_v12  ;;  %757 = vmatmul.msk.bf16.gmra.mxu3 %vm343_vm1, %v775_v13 }
  0x42   : > { %746 = vmatmul.msk.bf16.gmra.mxu0 %vm343_vm1, %v764_v14  ;;  %750 = vmatmul.msk.bf16.gmra.mxu1 %vm343_vm1, %v768_v15 }
  0x43   : > { %754 = vmatmul.msk.bf16.gmra.mxu2 %vm343_vm1, %v772_v16  ;;  %758 = vmatmul.msk.bf16.gmra.mxu3 %vm343_vm1, %v776_v17 }
  0x52   : > { %747 = vmatmul.msk.bf16.gmra.mxu0 %vm343_vm1, %v765_v18  ;;  %751 = vmatmul.msk.bf16.gmra.mxu1 %vm343_vm1, %v769_v19 }
  0x53   : > { %755 = vmatmul.msk.bf16.gmra.mxu2 %vm343_vm1, %v773_v20  ;;  %759 = vmatmul.msk.bf16.gmra.mxu3 %vm343_vm1, %v777_v21 }
  0x9f   : > { %v405_v22 = vpop.f32.mrf.mxu0  ;;  %v425_v23 = vpop.f32.mrf.mxu1 }
  0xa0   : > { %v406_v25 = vadd.f32 %v1094_v24, %v405_v22  ;;  %v426_v26 = vadd.f32 %v1094_v24, %v425_v23 }
  0xa2   : > { %v485_v33 = vmax.f32 %v406_v25, 0.0  ;;  %v493_v34 = vmax.f32 %v426_v26, 0.0 }
  0xa6   : > { %v445_v27 = vpop.f32.mrf.mxu2  ;;  %v465_v28 = vpop.f32.mrf.mxu3 }
  0xa7   : > { %v407_v29 = vpop.f32.mrf.mxu0  ;;  %v427_v30 = vpop.f32.mrf.mxu1  ;;  %v446_v39 = vadd.f32 %v1094_v24, %v445_v27  ;;  %v466_v40 = vadd.f32 %v1094_v24, %v465_v28 }
  0xa8   : > { %v408_v31 = vadd.f32 %v1094_v24, %v407_v29  ;;  %v428_v32 = vadd.f32 %v1094_v24, %v427_v30 }
  0xa9   : > { %v501_v47 = vmax.f32 %v446_v39, 0.0  ;;  %v509_v48 = vmax.f32 %v466_v40, 0.0 }
  0xaa   : > { %v486_v35 = vmax.f32 %v408_v31, 0.0  ;;  %v494_v36 = vmax.f32 %v428_v32, 0.0 }
  0xac   : > { %v783_v37 = vpack.c.bf16 %v486_v35, %v485_v33  ;;  %v803_v38 = vpack.c.bf16 %v494_v36, %v493_v34 }
  0xae   : > { %784 = vst [vmem:[%s1105_s8] sm:$0xff] %v783_v37   ;;  %v447_v41 = vpop.f32.mrf.mxu2  ;;  %v467_v42 = vpop.f32.mrf.mxu3 }
  0xaf   : > { %863 = vst [vmem:[%s1105_s8 + $0x20] sm:$0xff] %v803_v38   ;;  %v448_v43 = vadd.f32 %v1094_v24, %v447_v41  ;;  %v468_v44 = vadd.f32 %v1094_v24, %v467_v42  ;;  %v410_v45 = vpop.f32.mrf.mxu0  ;;  %v430_v46 = vpop.f32.mrf.mxu1 }
  0xb0   : > { %v411_v53 = vadd.f32 %v1094_v24, %v410_v45  ;;  %v431_v54 = vadd.f32 %v1094_v24, %v430_v46 }
  0xb1   : > { %v502_v49 = vmax.f32 %v448_v43, 0.0  ;;  %v510_v50 = vmax.f32 %v468_v44, 0.0 }
  0xb2   : > { %v487_v61 = vmax.f32 %v411_v53, 0.0  ;;  %v495_v62 = vmax.f32 %v431_v54, 0.0 }
  0xb3   : > { %v823_v51 = vpack.c.bf16 %v502_v49, %v501_v47  ;;  %v843_v52 = vpack.c.bf16 %v510_v50, %v509_v48 }
  0xb5   : > { %867 = vst [vmem:[%s1105_s8 + $0x40] sm:$0xff] %v823_v51  }
  0xb6   : > { %871 = vst [vmem:[%s1105_s8 + $0x60] sm:$0xff] %v843_v52   ;;  %v450_v55 = vpop.f32.mrf.mxu2  ;;  %v470_v56 = vpop.f32.mrf.mxu3 }
  0xb7   : > { %v412_v57 = vpop.f32.mrf.mxu0  ;;  %v432_v58 = vpop.f32.mrf.mxu1  ;;  %v451_v3 = vadd.f32 %v1094_v24, %v450_v55  ;;  %v471_v4 = vadd.f32 %v1094_v24, %v470_v56 }
  0xb8   : > { %v413_v59 = vadd.f32 %v1094_v24, %v412_v57  ;;  %v433_v60 = vadd.f32 %v1094_v24, %v432_v58 }
  0xb9   : > { %v503_v11 = vmax.f32 %v451_v3, 0.0  ;;  %v511_v12 = vmax.f32 %v471_v4, 0.0 }
  0xba   : > { %v488_v63 = vmax.f32 %v413_v59, 0.0  ;;  %v496_v0 = vmax.f32 %v433_v60, 0.0 }
  0xbc   : > { %v788_v1 = vpack.c.bf16 %v488_v63, %v487_v61  ;;  %v808_v2 = vpack.c.bf16 %v496_v0, %v495_v62 }
  0xbe   : > { %860 = vst [vmem:[%s1105_s8 + $0x8] sm:$0xff] %v788_v1   ;;  %v452_v5 = vpop.f32.mrf.mxu2  ;;  %v472_v6 = vpop.f32.mrf.mxu3 }
  0xbf   : > { %864 = vst [vmem:[%s1105_s8 + $0x28] sm:$0xff] %v808_v2   ;;  %v453_v7 = vadd.f32 %v1094_v24, %v452_v5  ;;  %v473_v8 = vadd.f32 %v1094_v24, %v472_v6  ;;  %v415_v9 = vpop.f32.mrf.mxu0  ;;  %v435_v10 = vpop.f32.mrf.mxu1 }
  0xc0   : > { %v416_v17 = vadd.f32 %v1094_v24, %v415_v9  ;;  %v436_v18 = vadd.f32 %v1094_v24, %v435_v10 }
  0xc1   : > { %v504_v13 = vmax.f32 %v453_v7, 0.0  ;;  %v512_v14 = vmax.f32 %v473_v8, 0.0 }
  0xc2   : > { %v489_v26 = vmax.f32 %v416_v17, 0.0  ;;  %v497_v27 = vmax.f32 %v436_v18, 0.0 }
  0xc3   : > { %v828_v15 = vpack.c.bf16 %v504_v13, %v503_v11  ;;  %v848_v16 = vpack.c.bf16 %v512_v14, %v511_v12 }
  0xc5   : > { %868 = vst [vmem:[%s1105_s8 + $0x48] sm:$0xff] %v828_v15  }
  0xc6   : > { %872 = vst [vmem:[%s1105_s8 + $0x68] sm:$0xff] %v848_v16   ;;  %v455_v19 = vpop.f32.mrf.mxu2  ;;  %v475_v20 = vpop.f32.mrf.mxu3 }
  0xc7   : > { %v417_v21 = vpop.f32.mrf.mxu0  ;;  %v437_v22 = vpop.f32.mrf.mxu1  ;;  %v456_v32 = vadd.f32 %v1094_v24, %v455_v19  ;;  %v476_v33 = vadd.f32 %v1094_v24, %v475_v20 }
  0xc8   : > { %v418_v23 = vadd.f32 %v1094_v24, %v417_v21  ;;  %v438_v25 = vadd.f32 %v1094_v24, %v437_v22 }
  0xc9   : > { %v505_v40 = vmax.f32 %v456_v32, 0.0  ;;  %v513_v41 = vmax.f32 %v476_v33, 0.0 }
  0xca   : > { %v490_v28 = vmax.f32 %v418_v23, 0.0  ;;  %v498_v29 = vmax.f32 %v438_v25, 0.0 }
  0xcc   : > { %v793_v30 = vpack.c.bf16 %v490_v28, %v489_v26  ;;  %v813_v31 = vpack.c.bf16 %v498_v29, %v497_v27 }
  0xce   : > { %861 = vst [vmem:[%s1105_s8 + $0x10] sm:$0xff] %v793_v30   ;;  %v457_v34 = vpop.f32.mrf.mxu2  ;;  %v477_v35 = vpop.f32.mrf.mxu3 }
  0xcf   : > { %865 = vst [vmem:[%s1105_s8 + $0x30] sm:$0xff] %v813_v31   ;;  %v458_v36 = vadd.f32 %v1094_v24, %v457_v34  ;;  %v478_v37 = vadd.f32 %v1094_v24, %v477_v35  ;;  %v420_v38 = vpop.f32.mrf.mxu0  ;;  %v440_v39 = vpop.f32.mrf.mxu1 }
  0xd0   : > { %v421_v46 = vadd.f32 %v1094_v24, %v420_v38  ;;  %v441_v47 = vadd.f32 %v1094_v24, %v440_v39 }
  0xd1   : > { %v506_v42 = vmax.f32 %v458_v36, 0.0  ;;  %v514_v43 = vmax.f32 %v478_v37, 0.0 }
  0xd2   : > { %v491_v54 = vmax.f32 %v421_v46, 0.0  ;;  %v499_v55 = vmax.f32 %v441_v47, 0.0 }
  0xd3   : > { %v833_v44 = vpack.c.bf16 %v506_v42, %v505_v40  ;;  %v853_v45 = vpack.c.bf16 %v514_v43, %v513_v41 }
  0xd5   : > { %869 = vst [vmem:[%s1105_s8 + $0x50] sm:$0xff] %v833_v44  }
  0xd6   : > { %873 = vst [vmem:[%s1105_s8 + $0x70] sm:$0xff] %v853_v45   ;;  %v460_v48 = vpop.f32.mrf.mxu2  ;;  %v480_v49 = vpop.f32.mrf.mxu3 }
  0xd7   : > { %v422_v50 = vpop.f32.mrf.mxu0  ;;  %v442_v51 = vpop.f32.mrf.mxu1  ;;  %v461_v60 = vadd.f32 %v1094_v24, %v460_v48  ;;  %v481_v61 = vadd.f32 %v1094_v24, %v480_v49 }
  0xd8   : > { %v423_v52 = vadd.f32 %v1094_v24, %v422_v50  ;;  %v443_v53 = vadd.f32 %v1094_v24, %v442_v51 }
  0xd9   : > { %v507_v2 = vmax.f32 %v461_v60, 0.0  ;;  %v515_v3 = vmax.f32 %v481_v61, 0.0 }
  0xda   : > { %v492_v56 = vmax.f32 %v423_v52, 0.0  ;;  %v500_v57 = vmax.f32 %v443_v53, 0.0 }
  0xdc   : > { %v798_v58 = vpack.c.bf16 %v492_v56, %v491_v54  ;;  %v818_v59 = vpack.c.bf16 %v500_v57, %v499_v55 }
  0xde   : > { %862 = vst [vmem:[%s1105_s8 + $0x18] sm:$0xff] %v798_v58   ;;  %v462_v62 = vpop.f32.mrf.mxu2  ;;  %v482_v63 = vpop.f32.mrf.mxu3 }
  0xdf   : > { %866 = vst [vmem:[%s1105_s8 + $0x38] sm:$0xff] %v818_v59   ;;  %v463_v0 = vadd.f32 %v1094_v24, %v462_v62  ;;  %v483_v1 = vadd.f32 %v1094_v24, %v482_v63 }
  0xe1   : > { %v508_v4 = vmax.f32 %v463_v0, 0.0  ;;  %v516_v5 = vmax.f32 %v483_v1, 0.0 }
  0xe3   : > { %v838_v6 = vpack.c.bf16 %v508_v4, %v507_v2  ;;  %v858_v7 = vpack.c.bf16 %v516_v5, %v515_v3 }
  0xe5   : > { %870 = vst [vmem:[%s1105_s8 + $0x58] sm:$0xff] %v838_v6  }
  0xe6   : > { %874 = vst [vmem:[%s1105_s8 + $0x78] sm:$0xff] %v858_v7  }
  0xe7 PF: > { %s15_s12 = sadd.s32 1, %s990_s12  }
  0xe8   : > { %p12_p7 = scmp.ge.s32.totalorder %s15_s12, 4  }
  0xea   :  { %14 = sbr.rel (!%p12_p7) target bundleno = 2 (0x2), region = 71 }
  0xef   :  { %603 = vsyncpa [#allocation3], 1 }
  0xf0   :  { %605 = vsyncpa [#allocation3 + $0x1], 1 }
  0xf1   :  { %606 = vsyncpa [#allocation5], 1 }

// kernel: stdf_forward.18
= control target key start
LH: loop header
LB: loop body
LE: loop exit
PB: predicated region body
PF: predicated region fallthrough
CT: control target
= control target key end

     0   :  { %vm136_vm0 = vcmask 1043456   ;;  %vm111_vm1 = vcmask 588800   ;;  %s466_s1 = inlined_call_operand.vmem [shape: bf16[72,128], index: 1, kind: input, shape index: {}]   ;;  %s467_s2 = inlined_call_operand.vmem [shape: f32[1,128], index: 2, kind: input, shape index: {}]   ;;  %s468_s0 = inlined_call_operand.vmem [shape: bf16[128,72], index: 0, kind: input, shape index: {}]   ;;  %s469_s3 = inlined_call_operand.vmem [shape: bf16[128,128], index: 3, kind: output, shape index: {}]  }
   0x1   :  { %v39_v0 = vld [vmem:[%s466_s1 + $0x20] sm:$0xf]  ;;  %v308_v4 = vld [vmem:[%s466_s1 + $0x18] sm:$0xff]  ;;  %v307_v5 = vld [vmem:[%s466_s1 + $0x10] sm:$0xff] }
   0x2   :  { %v101_v1 = vunpack.c.l.b16 %v39_v0  ;;  %v306_v6 = vld [vmem:[%s466_s1 + $0x8] sm:$0xff]  ;;  %v305_v7 = vld [vmem:[%s466_s1] sm:$0xff]  ;;  %v299_v9 = vld [vmem:[%s468_s0 + $0x10] sm:$0xff] }
   0x3   :  { %v297_v8 = vld [vmem:[%s468_s0] sm:$0xff]  ;;  %v303_v11 = vld [vmem:[%s468_s0 + $0x30] sm:$0xff]  ;;  %v298_v12 = vld [vmem:[%s468_s0 + $0x8] sm:$0xff] }
   0x4   :  { %v106_v2 = vpack.c.b16 %v101_v1, %v101_v1  ;;  %v301_v10 = vld [vmem:[%s468_s0 + $0x20] sm:$0xff]  ;;  %v300_v13 = vld [vmem:[%s468_s0 + $0x18] sm:$0xff]  ;;  %v302_v14 = vld [vmem:[%s468_s0 + $0x28] sm:$0xff] }
   0x5   :  { %v304_v15 = vld [vmem:[%s468_s0 + $0x38] sm:$0xff]  ;;  %v371_v18 = vld [vmem:[%s467_s2] ss:$0 sm:$0xff] }
   0x6   :  { %v138_v3 = vsel %vm136_vm0, %v106_v2, 0 }
   0x7   :  { %143 = vmatpush.bf16.msra.mxu0 %v138_v3  ;;  %356 = vmatpush.bf16.msra.mxu1 %v138_v3 }
   0x8   :  { %357 = vmatpush.bf16.msra.mxu2 %v138_v3  ;;  %358 = vmatpush.bf16.msra.mxu3 %v138_v3 }
   0xb   :  { %144 = vmatpush.bf16.msra.mxu0 %v308_v4  ;;  %359 = vmatpush.bf16.msra.mxu1 %v308_v4 }
   0xc   :  { %360 = vmatpush.bf16.msra.mxu2 %v308_v4  ;;  %361 = vmatpush.bf16.msra.mxu3 %v308_v4 }
   0xf   :  { %145 = vmatpush.bf16.msra.mxu0 %v307_v5  ;;  %362 = vmatpush.bf16.msra.mxu1 %v307_v5 }
  0x10   :  { %363 = vmatpush.bf16.msra.mxu2 %v307_v5  ;;  %364 = vmatpush.bf16.msra.mxu3 %v307_v5 }
  0x13   :  { %146 = vmatpush.bf16.msra.mxu0 %v306_v6  ;;  %365 = vmatpush.bf16.msra.mxu1 %v306_v6 }
  0x14   :  { %366 = vmatpush.bf16.msra.mxu2 %v306_v6  ;;  %367 = vmatpush.bf16.msra.mxu3 %v306_v6 }
  0x17   :  { %147 = vmatpush.bf16.msra.mxu0 %v305_v7  ;;  %368 = vmatpush.bf16.msra.mxu1 %v305_v7 }
  0x18   :  { %369 = vmatpush.bf16.msra.mxu2 %v305_v7  ;;  %370 = vmatpush.bf16.msra.mxu3 %v305_v7 }
  0x1a   :  { %289 = vmatmul.msk.bf16.vlgmr.msra.gmra.mxu0 %vm111_vm1, %v297_v8  ;;  %291 = vmatmul.msk.bf16.vlgmr.msra.gmra.mxu1 %vm111_vm1, %v299_v9 }
  0x1b   :  { %293 = vmatmul.msk.bf16.vlgmr.msra.gmra.mxu2 %vm111_vm1, %v301_v10  ;;  %295 = vmatmul.msk.bf16.vlgmr.msra.gmra.mxu3 %vm111_vm1, %v303_v11 }
  0x2a   :  { %290 = vmatmul.msk.bf16.gmra.mxu0 %vm111_vm1, %v298_v12  ;;  %292 = vmatmul.msk.bf16.gmra.mxu1 %vm111_vm1, %v300_v13 }
  0x2b   :  { %294 = vmatmul.msk.bf16.gmra.mxu2 %vm111_vm1, %v302_v14  ;;  %296 = vmatmul.msk.bf16.gmra.mxu3 %vm111_vm1, %v304_v15 }
  0x97   :  { %v149_v16 = vpop.f32.mrf.mxu0  ;;  %v159_v17 = vpop.f32.mrf.mxu1 }
  0x98   :  { %v150_v19 = vadd.f32 %v371_v18, %v149_v16  ;;  %v160_v20 = vadd.f32 %v371_v18, %v159_v17 }
  0x9a   :  { %v189_v27 = vmax.f32 %v150_v19, 0.0  ;;  %v193_v28 = vmax.f32 %v160_v20, 0.0 }
  0x9e   :  { %v169_v21 = vpop.f32.mrf.mxu2  ;;  %v179_v22 = vpop.f32.mrf.mxu3 }
  0x9f   :  { %v151_v23 = vpop.f32.mrf.mxu0  ;;  %v161_v24 = vpop.f32.mrf.mxu1  ;;  %v170_v33 = vadd.f32 %v371_v18, %v169_v21  ;;  %v180_v34 = vadd.f32 %v371_v18, %v179_v22 }
  0xa0   :  { %v152_v25 = vadd.f32 %v371_v18, %v151_v23  ;;  %v162_v26 = vadd.f32 %v371_v18, %v161_v24 }
  0xa1   :  { %v197_v41 = vmax.f32 %v170_v33, 0.0  ;;  %v201_v42 = vmax.f32 %v180_v34, 0.0 }
  0xa2   :  { %v190_v29 = vmax.f32 %v152_v25, 0.0  ;;  %v194_v30 = vmax.f32 %v162_v26, 0.0 }
  0xa4   :  { %v312_v31 = vpack.c.bf16 %v190_v29, %v189_v27  ;;  %v322_v32 = vpack.c.bf16 %v194_v30, %v193_v28 }
  0xa6   :  { %313 = vst [vmem:[%s469_s3] sm:$0xff] %v312_v31   ;;  %v171_v35 = vpop.f32.mrf.mxu2  ;;  %v181_v36 = vpop.f32.mrf.mxu3 }
  0xa7   :  { %350 = vst [vmem:[%s469_s3 + $0x10] sm:$0xff] %v322_v32   ;;  %v172_v37 = vadd.f32 %v371_v18, %v171_v35  ;;  %v182_v38 = vadd.f32 %v371_v18, %v181_v36  ;;  %v154_v39 = vpop.f32.mrf.mxu0  ;;  %v164_v40 = vpop.f32.mrf.mxu1 }
  0xa8   :  { %v155_v47 = vadd.f32 %v371_v18, %v154_v39  ;;  %v165_v48 = vadd.f32 %v371_v18, %v164_v40 }
  0xa9   :  { %v198_v43 = vmax.f32 %v172_v37, 0.0  ;;  %v202_v44 = vmax.f32 %v182_v38, 0.0 }
  0xaa   :  { %v191_v55 = vmax.f32 %v155_v47, 0.0  ;;  %v195_v56 = vmax.f32 %v165_v48, 0.0 }
  0xab   :  { %v332_v45 = vpack.c.bf16 %v198_v43, %v197_v41  ;;  %v342_v46 = vpack.c.bf16 %v202_v44, %v201_v42 }
  0xad   :  { %352 = vst [vmem:[%s469_s3 + $0x20] sm:$0xff] %v332_v45  }
  0xae   :  { %354 = vst [vmem:[%s469_s3 + $0x30] sm:$0xff] %v342_v46   ;;  %v174_v49 = vpop.f32.mrf.mxu2  ;;  %v184_v50 = vpop.f32.mrf.mxu3 }
  0xaf   :  { %v156_v51 = vpop.f32.mrf.mxu0  ;;  %v166_v52 = vpop.f32.mrf.mxu1  ;;  %v175_v61 = vadd.f32 %v371_v18, %v174_v49  ;;  %v185_v62 = vadd.f32 %v371_v18, %v184_v50 }
  0xb0   :  { %v157_v53 = vadd.f32 %v371_v18, %v156_v51  ;;  %v167_v54 = vadd.f32 %v371_v18, %v166_v52 }
  0xb1   :  { %v199_v3 = vmax.f32 %v175_v61, 0.0  ;;  %v203_v4 = vmax.f32 %v185_v62, 0.0 }
  0xb2   :  { %v192_v57 = vmax.f32 %v157_v53, 0.0  ;;  %v196_v58 = vmax.f32 %v167_v54, 0.0 }
  0xb4   :  { %v317_v59 = vpack.c.bf16 %v192_v57, %v191_v55  ;;  %v327_v60 = vpack.c.bf16 %v196_v58, %v195_v56 }
  0xb6   :  { %349 = vst [vmem:[%s469_s3 + $0x8] sm:$0xff] %v317_v59   ;;  %v176_v63 = vpop.f32.mrf.mxu2  ;;  %v186_v0 = vpop.f32.mrf.mxu3 }
  0xb7   :  { %351 = vst [vmem:[%s469_s3 + $0x18] sm:$0xff] %v327_v60   ;;  %v177_v1 = vadd.f32 %v371_v18, %v176_v63  ;;  %v187_v2 = vadd.f32 %v371_v18, %v186_v0 }
  0xb9   :  { %v200_v5 = vmax.f32 %v177_v1, 0.0  ;;  %v204_v6 = vmax.f32 %v187_v2, 0.0 }
  0xbb   :  { %v337_v7 = vpack.c.bf16 %v200_v5, %v199_v3  ;;  %v347_v8 = vpack.c.bf16 %v204_v6, %v203_v4 }
  0xbd   :  { %353 = vst [vmem:[%s469_s3 + $0x28] sm:$0xff] %v337_v7  }
  0xbe   :  { %355 = vst [vmem:[%s469_s3 + $0x38] sm:$0xff] %v347_v8  }

// kernel: stdf_forward.22
= control target key start
LH: loop header
LB: loop body
LE: loop exit
PB: predicated region body
PF: predicated region fallthrough
CT: control target
= control target key end

     0   :  { %vm91_vm0 = vcmask 261120   ;;  %s414_s1 = inlined_call_operand.vmem [shape: bf16[32,128], index: 1, kind: input, shape index: {}]   ;;  %s415_s0 = inlined_call_operand.vmem [shape: bf16[128,32], index: 0, kind: input, shape index: {}]   ;;  %s416_s2 = inlined_call_operand.vmem [shape: f32[1,128], index: 2, kind: input, shape index: {}]   ;;  %s417_s3 = inlined_call_operand.vmem [shape: bf16[128,128], index: 3, kind: output, shape index: {}]  }
   0x1   :  { %v274_v0 = vld [vmem:[%s414_s1 + $0x8] sm:$0xff]  ;;  %v273_v1 = vld [vmem:[%s414_s1] sm:$0xff]  ;;  %v267_v3 = vld [vmem:[%s415_s0 + $0x10] sm:$0xff] }
   0x2   :  { %122 = vmatpush.bf16.msra.mxu0 %v274_v0  ;;  %322 = vmatpush.bf16.msra.mxu1 %v274_v0  ;;  %v265_v2 = vld [vmem:[%s415_s0] sm:$0xff]  ;;  %v271_v5 = vld [vmem:[%s415_s0 + $0x30] sm:$0xff]  ;;  %v266_v6 = vld [vmem:[%s415_s0 + $0x8] sm:$0xff] }
   0x3   :  { %323 = vmatpush.bf16.msra.mxu2 %v274_v0  ;;  %324 = vmatpush.bf16.msra.mxu3 %v274_v0  ;;  %v269_v4 = vld [vmem:[%s415_s0 + $0x20] sm:$0xff]  ;;  %v268_v7 = vld [vmem:[%s415_s0 + $0x18] sm:$0xff]  ;;  %v270_v8 = vld [vmem:[%s415_s0 + $0x28] sm:$0xff] }
   0x4   :  { %v272_v9 = vld [vmem:[%s415_s0 + $0x38] sm:$0xff]  ;;  %v328_v12 = vld [vmem:[%s416_s2] ss:$0 sm:$0xff] }
   0x6   :  { %123 = vmatpush.bf16.msra.mxu0 %v273_v1  ;;  %325 = vmatpush.bf16.msra.mxu1 %v273_v1 }
   0x7   :  { %326 = vmatpush.bf16.msra.mxu2 %v273_v1  ;;  %327 = vmatpush.bf16.msra.mxu3 %v273_v1 }
   0x9   :  { %257 = vmatmul.msk.bf16.vlgmr.msra.gmra.mxu0 %vm91_vm0, %v265_v2  ;;  %259 = vmatmul.msk.bf16.vlgmr.msra.gmra.mxu1 %vm91_vm0, %v267_v3 }
   0xa   :  { %261 = vmatmul.msk.bf16.vlgmr.msra.gmra.mxu2 %vm91_vm0, %v269_v4  ;;  %263 = vmatmul.msk.bf16.vlgmr.msra.gmra.mxu3 %vm91_vm0, %v271_v5 }
  0x19   :  { %258 = vmatmul.msk.bf16.gmra.mxu0 %vm91_vm0, %v266_v6  ;;  %260 = vmatmul.msk.bf16.gmra.mxu1 %vm91_vm0, %v268_v7 }
  0x1a   :  { %262 = vmatmul.msk.bf16.gmra.mxu2 %vm91_vm0, %v270_v8  ;;  %264 = vmatmul.msk.bf16.gmra.mxu3 %vm91_vm0, %v272_v9 }
  0x86   :  { %v125_v10 = vpop.f32.mrf.mxu0  ;;  %v135_v11 = vpop.f32.mrf.mxu1 }
  0x87   :  { %v126_v13 = vadd.f32 %v328_v12, %v125_v10  ;;  %v136_v14 = vadd.f32 %v328_v12, %v135_v11 }
  0x89   :  { %v165_v21 = vmax.f32 %v126_v13, 0.0  ;;  %v169_v22 = vmax.f32 %v136_v14, 0.0 }
  0x8d   :  { %v145_v15 = vpop.f32.mrf.mxu2  ;;  %v155_v16 = vpop.f32.mrf.mxu3 }
  0x8e   :  { %v127_v17 = vpop.f32.mrf.mxu0  ;;  %v137_v18 = vpop.f32.mrf.mxu1  ;;  %v146_v27 = vadd.f32 %v328_v12, %v145_v15  ;;  %v156_v28 = vadd.f32 %v328_v12, %v155_v16 }
  0x8f   :  { %v128_v19 = vadd.f32 %v328_v12, %v127_v17  ;;  %v138_v20 = vadd.f32 %v328_v12, %v137_v18 }
  0x90   :  { %v173_v35 = vmax.f32 %v146_v27, 0.0  ;;  %v177_v36 = vmax.f32 %v156_v28, 0.0 }
  0x91   :  { %v166_v23 = vmax.f32 %v128_v19, 0.0  ;;  %v170_v24 = vmax.f32 %v138_v20, 0.0 }
  0x93   :  { %v278_v25 = vpack.c.bf16 %v166_v23, %v165_v21  ;;  %v288_v26 = vpack.c.bf16 %v170_v24, %v169_v22 }
  0x95   :  { %279 = vst [vmem:[%s417_s3] sm:$0xff] %v278_v25   ;;  %v147_v29 = vpop.f32.mrf.mxu2  ;;  %v157_v30 = vpop.f32.mrf.mxu3 }
  0x96   :  { %316 = vst [vmem:[%s417_s3 + $0x10] sm:$0xff] %v288_v26   ;;  %v148_v31 = vadd.f32 %v328_v12, %v147_v29  ;;  %v158_v32 = vadd.f32 %v328_v12, %v157_v30  ;;  %v130_v33 = vpop.f32.mrf.mxu0  ;;  %v140_v34 = vpop.f32.mrf.mxu1 }
  0x97   :  { %v131_v41 = vadd.f32 %v328_v12, %v130_v33  ;;  %v141_v42 = vadd.f32 %v328_v12, %v140_v34 }
  0x98   :  { %v174_v37 = vmax.f32 %v148_v31, 0.0  ;;  %v178_v38 = vmax.f32 %v158_v32, 0.0 }
  0x99   :  { %v167_v49 = vmax.f32 %v131_v41, 0.0  ;;  %v171_v50 = vmax.f32 %v141_v42, 0.0 }
  0x9a   :  { %v298_v39 = vpack.c.bf16 %v174_v37, %v173_v35  ;;  %v308_v40 = vpack.c.bf16 %v178_v38, %v177_v36 }
  0x9c   :  { %318 = vst [vmem:[%s417_s3 + $0x20] sm:$0xff] %v298_v39  }
  0x9d   :  { %320 = vst [vmem:[%s417_s3 + $0x30] sm:$0xff] %v308_v40   ;;  %v150_v43 = vpop.f32.mrf.mxu2  ;;  %v160_v44 = vpop.f32.mrf.mxu3 }
  0x9e   :  { %v132_v45 = vpop.f32.mrf.mxu0  ;;  %v142_v46 = vpop.f32.mrf.mxu1  ;;  %v151_v55 = vadd.f32 %v328_v12, %v150_v43  ;;  %v161_v56 = vadd.f32 %v328_v12, %v160_v44 }
  0x9f   :  { %v133_v47 = vadd.f32 %v328_v12, %v132_v45  ;;  %v143_v48 = vadd.f32 %v328_v12, %v142_v46 }
  0xa0   :  { %v175_v61 = vmax.f32 %v151_v55, 0.0  ;;  %v179_v62 = vmax.f32 %v161_v56, 0.0 }
  0xa1   :  { %v168_v51 = vmax.f32 %v133_v47, 0.0  ;;  %v172_v52 = vmax.f32 %v143_v48, 0.0 }
  0xa3   :  { %v283_v53 = vpack.c.bf16 %v168_v51, %v167_v49  ;;  %v293_v54 = vpack.c.bf16 %v172_v52, %v171_v50 }
  0xa5   :  { %315 = vst [vmem:[%s417_s3 + $0x8] sm:$0xff] %v283_v53   ;;  %v152_v57 = vpop.f32.mrf.mxu2  ;;  %v162_v58 = vpop.f32.mrf.mxu3 }
  0xa6   :  { %317 = vst [vmem:[%s417_s3 + $0x18] sm:$0xff] %v293_v54   ;;  %v153_v59 = vadd.f32 %v328_v12, %v152_v57  ;;  %v163_v60 = vadd.f32 %v328_v12, %v162_v58 }
  0xa8   :  { %v176_v63 = vmax.f32 %v153_v59, 0.0  ;;  %v180_v0 = vmax.f32 %v163_v60, 0.0 }
  0xaa   :  { %v303_v1 = vpack.c.bf16 %v176_v63, %v175_v61  ;;  %v313_v2 = vpack.c.bf16 %v180_v0, %v179_v62 }
  0xac   :  { %319 = vst [vmem:[%s417_s3 + $0x28] sm:$0xff] %v303_v1  }
  0xad   :  { %321 = vst [vmem:[%s417_s3 + $0x38] sm:$0xff] %v313_v2  }

// kernel: stdf_forward.26
= control target key start
LH: loop header
LB: loop body
LE: loop exit
PB: predicated region body
PF: predicated region fallthrough
CT: control target
= control target key end

     0   :  { %vm179_vm0 = vcmask 130048   ;;  %s740_s1 = inlined_call_operand.vmem [shape: bf16[144,128], index: 1, kind: input, shape index: {}]   ;;  %s741_s0 = inlined_call_operand.vmem [shape: bf16[128,144], index: 0, kind: input, shape index: {}]   ;;  %s742_s2 = inlined_call_operand.vmem [shape: f32[1,128], index: 2, kind: input, shape index: {}]   ;;  %s743_s3 = inlined_call_operand.vmem [shape: bf16[128,128], index: 3, kind: output, shape index: {}]  }
   0x1   :  { %v485_v0 = vld [vmem:[%s740_s1 + $0x38] sm:$0xff]  ;;  %v486_v1 = vld [vmem:[%s740_s1 + $0x40] sm:$0xff]  ;;  %v358_v3 = vld [vmem:[%s741_s0 + $0x8] sm:$0xf0] }
   0x2   :  { %v462_v2 = vld [vmem:[%s741_s0 + $0x4] sm:$0xf]  ;;  %204 = vmatpush.bf16.msra.mxu0 %v485_v0  ;;  %534 = vmatpush.bf16.msra.mxu2 %v485_v0  ;;  %v484_v5 = vld [vmem:[%s740_s1 + $0x30] sm:$0xff]  ;;  %v483_v6 = vld [vmem:[%s740_s1 + $0x28] sm:$0xff] }
   0x3   :  { %v361_v4 = vor.u32 %v462_v2, %v358_v3  ;;  %260 = vmatpush.bf16.msra.mxu1 %v486_v1  ;;  %542 = vmatpush.bf16.msra.mxu3 %v486_v1  ;;  %v472_v7 = vld [vmem:[%s741_s0 + $0x54] sm:$0xf]  ;;  %v398_v8 = vld [vmem:[%s741_s0 + $0x58] sm:$0xf0]  ;;  %v482_v10 = vld [vmem:[%s740_s1 + $0x20] sm:$0xff] }
   0x4   :  { %v401_v9 = vor.u32 %v472_v7, %v398_v8  ;;  %v481_v11 = vld [vmem:[%s740_s1 + $0x18] sm:$0xff]  ;;  %v464_v12 = vld [vmem:[%s741_s0 + $0x14] sm:$0xf]  ;;  %v479_v16 = vld [vmem:[%s740_s1 + $0x8] sm:$0xff] }
   0x5   :  { %v366_v13 = vld [vmem:[%s741_s0 + $0x18] sm:$0xf0]  ;;  %v480_v15 = vld [vmem:[%s740_s1 + $0x10] sm:$0xff]  ;;  %v474_v17 = vld [vmem:[%s741_s0 + $0x64] sm:$0xf] }
   0x6   :  { %454 = vmatmul.msk.bf16.vlgmr.msra.gmra.mxu1 %vm179_vm0, %v361_v4  ;;  %205 = vmatpush.bf16.msra.mxu0 %v484_v5  ;;  %v369_v14 = vor.u32 %v464_v12, %v366_v13  ;;  %v406_v18 = vld [vmem:[%s741_s0 + $0x68] sm:$0xf0]  ;;  %v478_v20 = vld [vmem:[%s740_s1] sm:$0xff]  ;;  %v463_v22 = vld [vmem:[%s741_s0 + $0x4] sm:$0xf0] }
   0x7   :  { %535 = vmatpush.bf16.msra.mxu2 %v484_v5  ;;  %459 = vmatmul.msk.bf16.vlgmr.msra.gmra.mxu3 %vm179_vm0, %v401_v9  ;;  %v409_v19 = vor.u32 %v474_v17, %v406_v18  ;;  %v356_v21 = vld [vmem:[%s741_s0] sm:$0xf]  ;;  %v471_v24 = vld [vmem:[%s741_s0 + $0x44] sm:$0xf0]  ;;  %v466_v27 = vld [vmem:[%s741_s0 + $0x24] sm:$0xf] }
   0x8   :  { %v388_v23 = vld [vmem:[%s741_s0 + $0x40] sm:$0xf]  ;;  %v357_v25 = vor.u32 %v463_v22, %v356_v21  ;;  %v374_v28 = vld [vmem:[%s741_s0 + $0x28] sm:$0xf0]  ;;  %v476_v30 = vld [vmem:[%s741_s0 + $0x74] sm:$0xf] }
   0x9   :  { %v389_v26 = vor.u32 %v471_v24, %v388_v23  ;;  %v377_v29 = vor.u32 %v466_v27, %v374_v28  ;;  %v414_v31 = vld [vmem:[%s741_s0 + $0x78] sm:$0xf0]  ;;  %v364_v33 = vld [vmem:[%s741_s0 + $0x10] sm:$0xf]  ;;  %v465_v34 = vld [vmem:[%s741_s0 + $0x14] sm:$0xf0] }
   0xa   :  { %206 = vmatpush.bf16.msra.mxu0 %v483_v6  ;;  %v417_v32 = vor.u32 %v476_v30, %v414_v31  ;;  %v396_v35 = vld [vmem:[%s741_s0 + $0x50] sm:$0xf]  ;;  %v473_v36 = vld [vmem:[%s741_s0 + $0x54] sm:$0xf0]  ;;  %v365_v37 = vor.u32 %v465_v34, %v364_v33  ;;  %v468_v39 = vld [vmem:[%s741_s0 + $0x34] sm:$0xf] }
   0xb   :  { %536 = vmatpush.bf16.msra.mxu2 %v483_v6  ;;  %v397_v38 = vor.u32 %v473_v36, %v396_v35  ;;  %v382_v40 = vld [vmem:[%s741_s0 + $0x38] sm:$0xf0]  ;;  %v372_v42 = vld [vmem:[%s741_s0 + $0x20] sm:$0xf]  ;;  %v467_v43 = vld [vmem:[%s741_s0 + $0x24] sm:$0xf0] }
   0xc   :  { %v385_v41 = vor.u32 %v468_v39, %v382_v40  ;;  %v404_v44 = vld [vmem:[%s741_s0 + $0x60] sm:$0xf]  ;;  %v475_v45 = vld [vmem:[%s741_s0 + $0x64] sm:$0xf0]  ;;  %v373_v46 = vor.u32 %v467_v43, %v372_v42  ;;  %v470_v48 = vld [vmem:[%s741_s0 + $0x44] sm:$0xf] }
   0xd   :  { %v405_v47 = vor.u32 %v475_v45, %v404_v44  ;;  %v390_v49 = vld [vmem:[%s741_s0 + $0x48] sm:$0xf0]  ;;  %v380_v51 = vld [vmem:[%s741_s0 + $0x30] sm:$0xf]  ;;  %v469_v52 = vld [vmem:[%s741_s0 + $0x34] sm:$0xf0] }
   0xe   :  { %207 = vmatpush.bf16.msra.mxu0 %v482_v10  ;;  %v393_v50 = vor.u32 %v470_v48, %v390_v49  ;;  %v412_v53 = vld [vmem:[%s741_s0 + $0x70] sm:$0xf]  ;;  %v477_v54 = vld [vmem:[%s741_s0 + $0x74] sm:$0xf0]  ;;  %v381_v55 = vor.u32 %v469_v52, %v380_v51  ;;  %v698_v62 = vld [vmem:[%s742_s2] ss:$0 sm:$0xff] }
   0xf   :  { %537 = vmatpush.bf16.msra.mxu2 %v482_v10  ;;  %v413_v56 = vor.u32 %v477_v54, %v412_v53 }
  0x12   :  { %208 = vmatpush.bf16.msra.mxu0 %v481_v11 }
  0x13   :  { %538 = vmatpush.bf16.msra.mxu2 %v481_v11 }
  0x16   :  { %455 = vmatmul.msk.bf16.gmra.mxu1 %vm179_vm0, %v369_v14  ;;  %209 = vmatpush.bf16.msra.mxu0 %v480_v15 }
  0x17   :  { %539 = vmatpush.bf16.msra.mxu2 %v480_v15  ;;  %460 = vmatmul.msk.bf16.gmra.mxu3 %vm179_vm0, %v409_v19 }
  0x1a   :  { %210 = vmatpush.bf16.msra.mxu0 %v479_v16 }
  0x1b   :  { %540 = vmatpush.bf16.msra.mxu2 %v479_v16 }
  0x1e   :  { %211 = vmatpush.bf16.msra.mxu0 %v478_v20 }
  0x1f   :  { %541 = vmatpush.bf16.msra.mxu2 %v478_v20 }
  0x21   :  { %212 = vmatmul.bf16.vlgmr.msra.gmra.mxu0 %v357_v25 }
  0x22   :  { %232 = vmatmul.bf16.vlgmr.msra.gmra.mxu2 %v389_v26 }
  0x26   :  { %456 = vmatmul.msk.bf16.gmra.mxu1 %vm179_vm0, %v377_v29 }
  0x27   :  { %461 = vmatmul.msk.bf16.gmra.mxu3 %vm179_vm0, %v417_v32 }
  0x31   :  { %217 = vmatmul.bf16.gmra.mxu0 %v365_v37 }
  0x32   :  { %237 = vmatmul.bf16.gmra.mxu2 %v397_v38 }
  0x36   :  { %457 = vmatmul.msk.bf16.gmra.mxu1 %vm179_vm0, %v385_v41 }
  0x41   :  { %222 = vmatmul.bf16.gmra.mxu0 %v373_v46 }
  0x42   :  { %242 = vmatmul.bf16.gmra.mxu2 %v405_v47 }
  0x46   :  { %458 = vmatmul.msk.bf16.gmra.mxu1 %vm179_vm0, %v393_v50 }
  0x51   :  { %227 = vmatmul.bf16.gmra.mxu0 %v381_v55 }
  0x52   :  { %247 = vmatmul.bf16.gmra.mxu2 %v413_v56 }
  0x83   :  { %v262_v57 = vpop.f32.mrf.mxu1 }
  0x8a   :  { %v287_v11 = vpop.f32.mrf.mxu3 }
  0x8b   :  { %v264_v58 = vpop.f32.mrf.mxu1 }
  0x92   :  { %v289_v19 = vpop.f32.mrf.mxu3 }
  0x93   :  { %v267_v59 = vpop.f32.mrf.mxu1 }
  0x9a   :  { %v292_v31 = vpop.f32.mrf.mxu3 }
  0x9b   :  { %v269_v60 = vpop.f32.mrf.mxu1 }
  0x9e   :  { %v213_v61 = vpop.f32.mrf.mxu0 }
  0x9f   :  { %v214_v63 = vadd.f32 %v698_v62, %v213_v61 }
  0xa1   :  { %v263_v3 = vadd.f32 %v262_v57, %v214_v63 }
  0xa2   :  { %v294_v48 = vpop.f32.mrf.mxu3 }
  0xa3   :  { %v272_v0 = vpop.f32.mrf.mxu1  ;;  %v302_v6 = vmax.f32 %v263_v3, 0.0 }
  0xa5   :  { %v233_v1 = vpop.f32.mrf.mxu2 }
  0xa6   :  { %v215_v2 = vpop.f32.mrf.mxu0  ;;  %v234_v41 = vadd.f32 %v698_v62, %v233_v1 }
  0xa7   :  { %v216_v4 = vadd.f32 %v698_v62, %v215_v2 }
  0xa9   :  { %v265_v5 = vadd.f32 %v264_v58, %v216_v4 }
  0xaa   :  { %v297_v1 = vpop.f32.mrf.mxu3 }
  0xab   :  { %v303_v7 = vmax.f32 %v265_v5, 0.0  ;;  %v274_v8 = vpop.f32.mrf.mxu1 }
  0xad   :  { %v490_v9 = vpack.c.bf16 %v303_v7, %v302_v6  ;;  %v235_v10 = vpop.f32.mrf.mxu2 }
  0xae   :  { %v218_v12 = vpop.f32.mrf.mxu0  ;;  %v236_v43 = vadd.f32 %v698_v62, %v235_v10 }
  0xaf   :  { %491 = vst [vmem:[%s743_s3] sm:$0xff] %v490_v9   ;;  %v219_v13 = vadd.f32 %v698_v62, %v218_v12 }
  0xb1   :  { %v268_v17 = vadd.f32 %v267_v59, %v219_v13 }
  0xb3   :  { %v277_v14 = vpop.f32.mrf.mxu1  ;;  %v304_v22 = vmax.f32 %v268_v17, 0.0 }
  0xb5   :  { %v238_v15 = vpop.f32.mrf.mxu2 }
  0xb6   :  { %v220_v16 = vpop.f32.mrf.mxu0  ;;  %v239_v21 = vadd.f32 %v698_v62, %v238_v15  ;;  %v299_v15 = vpop.f32.mrf.mxu3 }
  0xb7   :  { %v221_v18 = vadd.f32 %v698_v62, %v220_v16 }
  0xb8   :  { %v288_v27 = vadd.f32 %v287_v11, %v239_v21 }
  0xb9   :  { %v270_v20 = vadd.f32 %v269_v60, %v221_v18 }
  0xba   :  { %v312_v32 = vmax.f32 %v288_v27, 0.0 }
  0xbb   :  { %v305_v23 = vmax.f32 %v270_v20, 0.0  ;;  %v279_v24 = vpop.f32.mrf.mxu1 }
  0xbd   :  { %v495_v25 = vpack.c.bf16 %v305_v23, %v304_v22  ;;  %v240_v26 = vpop.f32.mrf.mxu2 }
  0xbe   :  { %v241_v28 = vadd.f32 %v698_v62, %v240_v26  ;;  %v223_v29 = vpop.f32.mrf.mxu0 }
  0xbf   :  { %527 = vst [vmem:[%s743_s3 + $0x8] sm:$0xff] %v495_v25   ;;  %v224_v34 = vadd.f32 %v698_v62, %v223_v29 }
  0xc0   :  { %v290_v30 = vadd.f32 %v289_v19, %v241_v28 }
  0xc1   :  { %v273_v39 = vadd.f32 %v272_v0, %v224_v34 }
  0xc2   :  { %v313_v33 = vmax.f32 %v290_v30, 0.0 }
  0xc3   :  { %v282_v35 = vpop.f32.mrf.mxu1  ;;  %v306_v46 = vmax.f32 %v273_v39, 0.0 }
  0xc4   :  { %v515_v36 = vpack.c.bf16 %v313_v33, %v312_v32  ;;  %v283_v44 = vadd.f32 %v282_v35, %v234_v41 }
  0xc5   :  { %v243_v37 = vpop.f32.mrf.mxu2 }
  0xc6   :  { %531 = vst [vmem:[%s743_s3 + $0x28] sm:$0xff] %v515_v36   ;;  %v225_v38 = vpop.f32.mrf.mxu0  ;;  %v244_v45 = vadd.f32 %v698_v62, %v243_v37  ;;  %v310_v53 = vmax.f32 %v283_v44, 0.0 }
  0xc7   :  { %v226_v40 = vadd.f32 %v698_v62, %v225_v38 }
  0xc8   :  { %v293_v54 = vadd.f32 %v292_v31, %v244_v45 }
  0xc9   :  { %v275_v42 = vadd.f32 %v274_v8, %v226_v40 }
  0xca   :  { %v314_v60 = vmax.f32 %v293_v54, 0.0 }
  0xcb   :  { %v307_v47 = vmax.f32 %v275_v42, 0.0  ;;  %v284_v49 = vpop.f32.mrf.mxu1 }
  0xcc   :  { %v285_v50 = vadd.f32 %v284_v49, %v236_v43 }
  0xcd   :  { %v500_v51 = vpack.c.bf16 %v307_v47, %v306_v46  ;;  %v245_v52 = vpop.f32.mrf.mxu2 }
  0xce   :  { %v311_v55 = vmax.f32 %v285_v50, 0.0  ;;  %v246_v56 = vadd.f32 %v698_v62, %v245_v52  ;;  %v228_v57 = vpop.f32.mrf.mxu0 }
  0xcf   :  { %528 = vst [vmem:[%s743_s3 + $0x10] sm:$0xff] %v500_v51   ;;  %v229_v63 = vadd.f32 %v698_v62, %v228_v57 }
  0xd0   :  { %v510_v58 = vpack.c.bf16 %v311_v55, %v310_v53  ;;  %v295_v59 = vadd.f32 %v294_v48, %v246_v56 }
  0xd1   :  { %v278_v4 = vadd.f32 %v277_v14, %v229_v63 }
  0xd2   :  { %530 = vst [vmem:[%s743_s3 + $0x20] sm:$0xff] %v510_v58   ;;  %v315_v61 = vmax.f32 %v295_v59, 0.0 }
  0xd3   :  { %v308_v8 = vmax.f32 %v278_v4, 0.0 }
  0xd4   :  { %v520_v0 = vpack.c.bf16 %v315_v61, %v314_v60 }
  0xd5   :  { %v248_v2 = vpop.f32.mrf.mxu2 }
  0xd6   :  { %532 = vst [vmem:[%s743_s3 + $0x30] sm:$0xff] %v520_v0   ;;  %v230_v3 = vpop.f32.mrf.mxu0  ;;  %v249_v7 = vadd.f32 %v698_v62, %v248_v2 }
  0xd7   :  { %v231_v5 = vadd.f32 %v698_v62, %v230_v3 }
  0xd8   :  { %v298_v12 = vadd.f32 %v297_v1, %v249_v7 }
  0xd9   :  { %v280_v6 = vadd.f32 %v279_v24, %v231_v5 }
  0xda   :  { %v316_v17 = vmax.f32 %v298_v12, 0.0 }
  0xdb   :  { %v309_v9 = vmax.f32 %v280_v6, 0.0 }
  0xdd   :  { %v505_v10 = vpack.c.bf16 %v309_v9, %v308_v8  ;;  %v250_v11 = vpop.f32.mrf.mxu2 }
  0xde   :  { %v251_v13 = vadd.f32 %v698_v62, %v250_v11 }
  0xdf   :  { %529 = vst [vmem:[%s743_s3 + $0x18] sm:$0xff] %v505_v10  }
  0xe0   :  { %v300_v16 = vadd.f32 %v299_v15, %v251_v13 }
  0xe2   :  { %v317_v14 = vmax.f32 %v300_v16, 0.0 }
  0xe4   :  { %v525_v18 = vpack.c.bf16 %v317_v14, %v316_v17 }
  0xe6   :  { %533 = vst [vmem:[%s743_s3 + $0x38] sm:$0xff] %v525_v18  }

// kernel: stdf_forward.31
= control target key start
LH: loop header
LB: loop body
LE: loop exit
PB: predicated region body
PF: predicated region fallthrough
CT: control target
= control target key end

     0   :  { %s895_s12 = smov 0   ;;  %s1023_s0 = inlined_call_operand.vmem [shape: bf16[512,72], index: 0, kind: input, shape index: {}]   ;;  %s1024_s1 = inlined_call_operand.vmem [shape: bf16[72,128], index: 1, kind: input, shape index: {}]   ;;  %s1025_s2 = inlined_call_operand.vmem [shape: f32[1,128], index: 2, kind: input, shape index: {}]   ;;  %s1026_s3 = inlined_call_operand.vmem [shape: bf16[512,128], index: 3, kind: output, shape index: {}]  }
   0x1 LB: > { %s621_s13 = sadd.s32 4294967295, %s873_s12   ;;  %p625_p0 = scmp.ge.s32.totalorder %s873_s12, 1  ;;  %s873_s12 = sphi %s895_s12, %s13_s12  }
   0x2   : > { %p138_p1 = scmp.lt.s32.totalorder %s873_s12, 3 }
   0x4   : > { %p139_p2 = pnand %p625_p0, %p138_p1 }
   0x5   : > { %s626_s16 = sshll.u32 (!%p139_p2), %s621_s13, 5 }
   0x6   : > { %142 = sbr.rel (%p139_p2) target bundleno = 233 (0xe9), region = 32  ;;  %p163_p3 = scmp.lt.s32.totalorder (!%p139_p2), %s626_s16, 63 }
   0xb   : > { %v215_v0 = vld [vmem:[%s1024_s1 + $0x20] sm:$0xf]  ;;  %vm376_vm0 = vcmask 1043456   ;;  %v747_v4 = vld [vmem:[%s1024_s1 + $0x18] sm:$0xff]  ;;  %v746_v5 = vld [vmem:[%s1024_s1 + $0x10] sm:$0xff]  ;;  %s1028_s16 = smov (!%p163_p3, %s626_s16), 63 }
   0xc   : > { %v317_v1 = vunpack.c.l.b16 %v215_v0  ;;  %v745_v6 = vld [vmem:[%s1024_s1 + $0x8] sm:$0xff]  ;;  %s627_s23 = sshll.u32 %s1028_s16, 2  ;;  %v744_v7 = vld [vmem:[%s1024_s1] sm:$0xff]  ;;  %vm327_vm1 = vcmask 588800  }
   0xd   : > { %s926_s28 = scalar_lea.vmem %s1023_s0, %s627_s23  ;;  %v963_v26 = vld [vmem:[%s1025_s2] ss:$0 sm:$0xff]  ;;  %s974_s6 = scalar_lea.vmem %s1026_s3, %s627_s23 }
   0xe   : > { %v322_v2 = vpack.c.b16 %v317_v1, %v317_v1  ;;  %v728_v8 = vld [vmem:[%s926_s28] sm:$0xff]  ;;  %v729_v12 = vld [vmem:[%s926_s28 + $0x8] sm:$0xff]  ;;  %v730_v16 = vld [vmem:[%s926_s28 + $0x10] sm:$0xff] }
   0xf   : > { %v732_v9 = vld [vmem:[%s926_s28 + $0x20] sm:$0xff]  ;;  %v733_v13 = vld [vmem:[%s926_s28 + $0x28] sm:$0xff]  ;;  %v734_v17 = vld [vmem:[%s926_s28 + $0x30] sm:$0xff] }
  0x10   : > { %v378_v3 = vsel %vm376_vm0, %v322_v2, 0  ;;  %v736_v10 = vld [vmem:[%s926_s28 + $0x40] sm:$0xff]  ;;  %v737_v14 = vld [vmem:[%s926_s28 + $0x48] sm:$0xff]  ;;  %v738_v18 = vld [vmem:[%s926_s28 + $0x50] sm:$0xff] }
  0x11   : > { %383 = vmatpush.bf16.msra.mxu0 %v378_v3  ;;  %843 = vmatpush.bf16.msra.mxu1 %v378_v3  ;;  %v740_v11 = vld [vmem:[%s926_s28 + $0x60] sm:$0xff]  ;;  %v741_v15 = vld [vmem:[%s926_s28 + $0x68] sm:$0xff]  ;;  %v742_v19 = vld [vmem:[%s926_s28 + $0x70] sm:$0xff] }
  0x12   : > { %844 = vmatpush.bf16.msra.mxu2 %v378_v3  ;;  %845 = vmatpush.bf16.msra.mxu3 %v378_v3  ;;  %v731_v20 = vld [vmem:[%s926_s28 + $0x18] sm:$0xff] }
  0x13   : > { %v735_v21 = vld [vmem:[%s926_s28 + $0x38] sm:$0xff] }
  0x14   : > { %v739_v22 = vld [vmem:[%s926_s28 + $0x58] sm:$0xff] }
  0x15   : > { %384 = vmatpush.bf16.msra.mxu0 %v747_v4  ;;  %846 = vmatpush.bf16.msra.mxu1 %v747_v4  ;;  %v743_v23 = vld [vmem:[%s926_s28 + $0x78] sm:$0xff] }
  0x16   : > { %847 = vmatpush.bf16.msra.mxu2 %v747_v4  ;;  %848 = vmatpush.bf16.msra.mxu3 %v747_v4 }
  0x19   : > { %385 = vmatpush.bf16.msra.mxu0 %v746_v5  ;;  %849 = vmatpush.bf16.msra.mxu1 %v746_v5 }
  0x1a   : > { %850 = vmatpush.bf16.msra.mxu2 %v746_v5  ;;  %851 = vmatpush.bf16.msra.mxu3 %v746_v5 }
  0x1d   : > { %386 = vmatpush.bf16.msra.mxu0 %v745_v6  ;;  %852 = vmatpush.bf16.msra.mxu1 %v745_v6 }
  0x1e   : > { %853 = vmatpush.bf16.msra.mxu2 %v745_v6  ;;  %854 = vmatpush.bf16.msra.mxu3 %v745_v6 }
  0x21   : > { %387 = vmatpush.bf16.msra.mxu0 %v744_v7  ;;  %855 = vmatpush.bf16.msra.mxu1 %v744_v7 }
  0x22   : > { %856 = vmatpush.bf16.msra.mxu2 %v744_v7  ;;  %857 = vmatpush.bf16.msra.mxu3 %v744_v7 }
  0x24   : > { %710 = vmatmul.msk.bf16.vlgmr.msra.gmra.mxu0 %vm327_vm1, %v728_v8  ;;  %714 = vmatmul.msk.bf16.vlgmr.msra.gmra.mxu1 %vm327_vm1, %v732_v9 }
  0x25   : > { %718 = vmatmul.msk.bf16.vlgmr.msra.gmra.mxu2 %vm327_vm1, %v736_v10  ;;  %722 = vmatmul.msk.bf16.vlgmr.msra.gmra.mxu3 %vm327_vm1, %v740_v11 }
  0x34   : > { %711 = vmatmul.msk.bf16.gmra.mxu0 %vm327_vm1, %v729_v12  ;;  %715 = vmatmul.msk.bf16.gmra.mxu1 %vm327_vm1, %v733_v13 }
  0x35   : > { %719 = vmatmul.msk.bf16.gmra.mxu2 %vm327_vm1, %v737_v14  ;;  %723 = vmatmul.msk.bf16.gmra.mxu3 %vm327_vm1, %v741_v15 }
  0x44   : > { %712 = vmatmul.msk.bf16.gmra.mxu0 %vm327_vm1, %v730_v16  ;;  %716 = vmatmul.msk.bf16.gmra.mxu1 %vm327_vm1, %v734_v17 }
  0x45   : > { %720 = vmatmul.msk.bf16.gmra.mxu2 %vm327_vm1, %v738_v18  ;;  %724 = vmatmul.msk.bf16.gmra.mxu3 %vm327_vm1, %v742_v19 }
  0x54   : > { %713 = vmatmul.msk.bf16.gmra.mxu0 %vm327_vm1, %v731_v20  ;;  %717 = vmatmul.msk.bf16.gmra.mxu1 %vm327_vm1, %v735_v21 }
  0x55   : > { %721 = vmatmul.msk.bf16.gmra.mxu2 %vm327_vm1, %v739_v22  ;;  %725 = vmatmul.msk.bf16.gmra.mxu3 %vm327_vm1, %v743_v23 }
  0xa1   : > { %v389_v24 = vpop.f32.mrf.mxu0  ;;  %v409_v25 = vpop.f32.mrf.mxu1 }
  0xa2   : > { %v390_v27 = vadd.f32 %v963_v26, %v389_v24  ;;  %v410_v28 = vadd.f32 %v963_v26, %v409_v25 }
  0xa4   : > { %v469_v35 = vmax.f32 %v390_v27, 0.0  ;;  %v477_v36 = vmax.f32 %v410_v28, 0.0 }
  0xa8   : > { %v429_v29 = vpop.f32.mrf.mxu2  ;;  %v449_v30 = vpop.f32.mrf.mxu3 }
  0xa9   : > { %v391_v31 = vpop.f32.mrf.mxu0  ;;  %v411_v32 = vpop.f32.mrf.mxu1  ;;  %v430_v41 = vadd.f32 %v963_v26, %v429_v29  ;;  %v450_v42 = vadd.f32 %v963_v26, %v449_v30 }
  0xaa   : > { %v392_v33 = vadd.f32 %v963_v26, %v391_v31  ;;  %v412_v34 = vadd.f32 %v963_v26, %v411_v32 }
  0xab   : > { %v485_v49 = vmax.f32 %v430_v41, 0.0  ;;  %v493_v50 = vmax.f32 %v450_v42, 0.0 }
  0xac   : > { %v470_v37 = vmax.f32 %v392_v33, 0.0  ;;  %v478_v38 = vmax.f32 %v412_v34, 0.0 }
  0xae   : > { %v751_v39 = vpack.c.bf16 %v470_v37, %v469_v35  ;;  %v771_v40 = vpack.c.bf16 %v478_v38, %v477_v36 }
  0xb0   : > { %752 = vst [vmem:[%s974_s6] sm:$0xff] %v751_v39   ;;  %v431_v43 = vpop.f32.mrf.mxu2  ;;  %v451_v44 = vpop.f32.mrf.mxu3 }
  0xb1   : > { %831 = vst [vmem:[%s974_s6 + $0x20] sm:$0xff] %v771_v40   ;;  %v432_v45 = vadd.f32 %v963_v26, %v431_v43  ;;  %v452_v46 = vadd.f32 %v963_v26, %v451_v44  ;;  %v394_v47 = vpop.f32.mrf.mxu0  ;;  %v414_v48 = vpop.f32.mrf.mxu1 }
  0xb2   : > { %v395_v55 = vadd.f32 %v963_v26, %v394_v47  ;;  %v415_v56 = vadd.f32 %v963_v26, %v414_v48 }
  0xb3   : > { %v486_v51 = vmax.f32 %v432_v45, 0.0  ;;  %v494_v52 = vmax.f32 %v452_v46, 0.0 }
  0xb4   : > { %v471_v63 = vmax.f32 %v395_v55, 0.0  ;;  %v479_v0 = vmax.f32 %v415_v56, 0.0 }
  0xb5   : > { %v791_v53 = vpack.c.bf16 %v486_v51, %v485_v49  ;;  %v811_v54 = vpack.c.bf16 %v494_v52, %v493_v50 }
  0xb7   : > { %835 = vst [vmem:[%s974_s6 + $0x40] sm:$0xff] %v791_v53  }
  0xb8   : > { %839 = vst [vmem:[%s974_s6 + $0x60] sm:$0xff] %v811_v54   ;;  %v434_v57 = vpop.f32.mrf.mxu2  ;;  %v454_v58 = vpop.f32.mrf.mxu3 }
  0xb9   : > { %v396_v59 = vpop.f32.mrf.mxu0  ;;  %v416_v60 = vpop.f32.mrf.mxu1  ;;  %v435_v5 = vadd.f32 %v963_v26, %v434_v57  ;;  %v455_v6 = vadd.f32 %v963_v26, %v454_v58 }
  0xba   : > { %v397_v61 = vadd.f32 %v963_v26, %v396_v59  ;;  %v417_v62 = vadd.f32 %v963_v26, %v416_v60 }
  0xbb   : > { %v487_v13 = vmax.f32 %v435_v5, 0.0  ;;  %v495_v14 = vmax.f32 %v455_v6, 0.0 }
  0xbc   : > { %v472_v1 = vmax.f32 %v397_v61, 0.0  ;;  %v480_v2 = vmax.f32 %v417_v62, 0.0 }
  0xbe   : > { %v756_v3 = vpack.c.bf16 %v472_v1, %v471_v63  ;;  %v776_v4 = vpack.c.bf16 %v480_v2, %v479_v0 }
  0xc0   : > { %828 = vst [vmem:[%s974_s6 + $0x8] sm:$0xff] %v756_v3   ;;  %v436_v7 = vpop.f32.mrf.mxu2  ;;  %v456_v8 = vpop.f32.mrf.mxu3 }
  0xc1   : > { %832 = vst [vmem:[%s974_s6 + $0x28] sm:$0xff] %v776_v4   ;;  %v437_v9 = vadd.f32 %v963_v26, %v436_v7  ;;  %v457_v10 = vadd.f32 %v963_v26, %v456_v8  ;;  %v399_v11 = vpop.f32.mrf.mxu0  ;;  %v419_v12 = vpop.f32.mrf.mxu1 }
  0xc2   : > { %v400_v19 = vadd.f32 %v963_v26, %v399_v11  ;;  %v420_v20 = vadd.f32 %v963_v26, %v419_v12 }
  0xc3   : > { %v488_v15 = vmax.f32 %v437_v9, 0.0  ;;  %v496_v16 = vmax.f32 %v457_v10, 0.0 }
  0xc4   : > { %v473_v28 = vmax.f32 %v400_v19, 0.0  ;;  %v481_v29 = vmax.f32 %v420_v20, 0.0 }
  0xc5   : > { %v796_v17 = vpack.c.bf16 %v488_v15, %v487_v13  ;;  %v816_v18 = vpack.c.bf16 %v496_v16, %v495_v14 }
  0xc7   : > { %836 = vst [vmem:[%s974_s6 + $0x48] sm:$0xff] %v796_v17  }
  0xc8   : > { %840 = vst [vmem:[%s974_s6 + $0x68] sm:$0xff] %v816_v18   ;;  %v439_v21 = vpop.f32.mrf.mxu2  ;;  %v459_v22 = vpop.f32.mrf.mxu3 }
  0xc9   : > { %v401_v23 = vpop.f32.mrf.mxu0  ;;  %v421_v24 = vpop.f32.mrf.mxu1  ;;  %v440_v34 = vadd.f32 %v963_v26, %v439_v21  ;;  %v460_v35 = vadd.f32 %v963_v26, %v459_v22 }
  0xca   : > { %v402_v25 = vadd.f32 %v963_v26, %v401_v23  ;;  %v422_v27 = vadd.f32 %v963_v26, %v421_v24 }
  0xcb   : > { %v489_v42 = vmax.f32 %v440_v34, 0.0  ;;  %v497_v43 = vmax.f32 %v460_v35, 0.0 }
  0xcc   : > { %v474_v30 = vmax.f32 %v402_v25, 0.0  ;;  %v482_v31 = vmax.f32 %v422_v27, 0.0 }
  0xce   : > { %v761_v32 = vpack.c.bf16 %v474_v30, %v473_v28  ;;  %v781_v33 = vpack.c.bf16 %v482_v31, %v481_v29 }
  0xd0   : > { %829 = vst [vmem:[%s974_s6 + $0x10] sm:$0xff] %v761_v32   ;;  %v441_v36 = vpop.f32.mrf.mxu2  ;;  %v461_v37 = vpop.f32.mrf.mxu3 }
  0xd1   : > { %833 = vst [vmem:[%s974_s6 + $0x30] sm:$0xff] %v781_v33   ;;  %v442_v38 = vadd.f32 %v963_v26, %v441_v36  ;;  %v462_v39 = vadd.f32 %v963_v26, %v461_v37  ;;  %v404_v40 = vpop.f32.mrf.mxu0  ;;  %v424_v41 = vpop.f32.mrf.mxu1 }
  0xd2   : > { %v405_v48 = vadd.f32 %v963_v26, %v404_v40  ;;  %v425_v49 = vadd.f32 %v963_v26, %v424_v41 }
  0xd3   : > { %v490_v44 = vmax.f32 %v442_v38, 0.0  ;;  %v498_v45 = vmax.f32 %v462_v39, 0.0 }
  0xd4   : > { %v475_v56 = vmax.f32 %v405_v48, 0.0  ;;  %v483_v57 = vmax.f32 %v425_v49, 0.0 }
  0xd5   : > { %v801_v46 = vpack.c.bf16 %v490_v44, %v489_v42  ;;  %v821_v47 = vpack.c.bf16 %v498_v45, %v497_v43 }
  0xd7   : > { %837 = vst [vmem:[%s974_s6 + $0x50] sm:$0xff] %v801_v46  }
  0xd8   : > { %841 = vst [vmem:[%s974_s6 + $0x70] sm:$0xff] %v821_v47   ;;  %v444_v50 = vpop.f32.mrf.mxu2  ;;  %v464_v51 = vpop.f32.mrf.mxu3 }
  0xd9   : > { %v406_v52 = vpop.f32.mrf.mxu0  ;;  %v426_v53 = vpop.f32.mrf.mxu1  ;;  %v445_v62 = vadd.f32 %v963_v26, %v444_v50  ;;  %v465_v63 = vadd.f32 %v963_v26, %v464_v51 }
  0xda   : > { %v407_v54 = vadd.f32 %v963_v26, %v406_v52  ;;  %v427_v55 = vadd.f32 %v963_v26, %v426_v53 }
  0xdb   : > { %v491_v4 = vmax.f32 %v445_v62, 0.0  ;;  %v499_v5 = vmax.f32 %v465_v63, 0.0 }
  0xdc   : > { %v476_v58 = vmax.f32 %v407_v54, 0.0  ;;  %v484_v59 = vmax.f32 %v427_v55, 0.0 }
  0xde   : > { %v766_v60 = vpack.c.bf16 %v476_v58, %v475_v56  ;;  %v786_v61 = vpack.c.bf16 %v484_v59, %v483_v57 }
  0xe0   : > { %830 = vst [vmem:[%s974_s6 + $0x18] sm:$0xff] %v766_v60   ;;  %v446_v0 = vpop.f32.mrf.mxu2  ;;  %v466_v1 = vpop.f32.mrf.mxu3 }
  0xe1   : > { %834 = vst [vmem:[%s974_s6 + $0x38] sm:$0xff] %v786_v61   ;;  %v447_v2 = vadd.f32 %v963_v26, %v446_v0  ;;  %v467_v3 = vadd.f32 %v963_v26, %v466_v1 }
  0xe3   : > { %v492_v6 = vmax.f32 %v447_v2, 0.0  ;;  %v500_v7 = vmax.f32 %v467_v3, 0.0 }
  0xe5   : > { %v806_v8 = vpack.c.bf16 %v492_v6, %v491_v4  ;;  %v826_v9 = vpack.c.bf16 %v500_v7, %v499_v5 }
  0xe7   : > { %838 = vst [vmem:[%s974_s6 + $0x58] sm:$0xff] %v806_v8  }
  0xe8   : > { %842 = vst [vmem:[%s974_s6 + $0x78] sm:$0xff] %v826_v9  }
  0xe9 PF: > { %s13_s12 = sadd.s32 1, %s873_s12  }
  0xea   : > { %p10_p4 = scmp.ge.s32.totalorder %s13_s12, 4  }
  0xec   :  { %12 = sbr.rel (!%p10_p4) target bundleno = 1 (0x1), region = 62 }

// kernel: stdf_forward.32
= control target key start
LH: loop header
LB: loop body
LE: loop exit
PB: predicated region body
PF: predicated region fallthrough
CT: control target
= control target key end

     0   :  { %s736_s12 = smov 0   ;;  %s877_s0 = inlined_call_operand.vmem [shape: bf16[512,72], index: 0, kind: input, shape index: {}]   ;;  %s878_s1 = inlined_call_operand.vmem [shape: bf16[72,128], index: 1, kind: input, shape index: {}]   ;;  %s879_s2 = inlined_call_operand.vmem [shape: f32[1,128], index: 2, kind: input, shape index: {}]   ;;  %s880_s3 = inlined_call_operand.vmem [shape: f32[512,128], index: 3, kind: output, shape index: {}]  }
   0x1 LB: > { %s557_s13 = sadd.s32 4294967295, %s714_s12   ;;  %p561_p0 = scmp.ge.s32.totalorder %s714_s12, 1  ;;  %s714_s12 = sphi %s736_s12, %s13_s12  }
   0x2   : > { %p138_p1 = scmp.lt.s32.totalorder %s714_s12, 3 }
   0x4   : > { %p139_p2 = pnand %p561_p0, %p138_p1 }
   0x5   : > { %s562_s16 = sshll.u32 (!%p139_p2), %s557_s13, 5 }
   0x6   : > { %142 = sbr.rel (%p139_p2) target bundleno = 229 (0xe5), region = 32  ;;  %p163_p3 = scmp.lt.s32.totalorder (!%p139_p2), %s562_s16, 63 }
   0xb   : > { %v215_v0 = vld [vmem:[%s878_s1 + $0x20] sm:$0xf]  ;;  %vm376_vm0 = vcmask 1043456   ;;  %v683_v4 = vld [vmem:[%s878_s1 + $0x18] sm:$0xff]  ;;  %v682_v5 = vld [vmem:[%s878_s1 + $0x10] sm:$0xff]  ;;  %s882_s16 = smov (!%p163_p3, %s562_s16), 63 }
   0xc   : > { %v317_v1 = vunpack.c.l.b16 %v215_v0  ;;  %v681_v6 = vld [vmem:[%s878_s1 + $0x8] sm:$0xff]  ;;  %s563_s23 = sshll.u32 %s882_s16, 2  ;;  %v680_v7 = vld [vmem:[%s878_s1] sm:$0xff]  ;;  %vm327_vm1 = vcmask 588800   ;;  %s565_s29 = sshll.u32 %s882_s16, 3 }
   0xd   : > { %s765_s28 = scalar_lea.vmem %s877_s0, %s563_s23  ;;  %v803_v24 = vld [vmem:[%s879_s2] ss:$0 sm:$0xff]  ;;  %s808_s7 = scalar_lea.vmem %s880_s3, %s565_s29 }
   0xe   : > { %v322_v2 = vpack.c.b16 %v317_v1, %v317_v1  ;;  %v664_v8 = vld [vmem:[%s765_s28] sm:$0xff]  ;;  %v665_v12 = vld [vmem:[%s765_s28 + $0x8] sm:$0xff]  ;;  %v666_v16 = vld [vmem:[%s765_s28 + $0x10] sm:$0xff] }
   0xf   : > { %v668_v9 = vld [vmem:[%s765_s28 + $0x20] sm:$0xff]  ;;  %v669_v13 = vld [vmem:[%s765_s28 + $0x28] sm:$0xff]  ;;  %v670_v17 = vld [vmem:[%s765_s28 + $0x30] sm:$0xff] }
  0x10   : > { %v378_v3 = vsel %vm376_vm0, %v322_v2, 0  ;;  %v672_v10 = vld [vmem:[%s765_s28 + $0x40] sm:$0xff]  ;;  %v673_v14 = vld [vmem:[%s765_s28 + $0x48] sm:$0xff]  ;;  %v674_v18 = vld [vmem:[%s765_s28 + $0x50] sm:$0xff] }
  0x11   : > { %383 = vmatpush.bf16.msra.mxu0 %v378_v3  ;;  %684 = vmatpush.bf16.msra.mxu1 %v378_v3  ;;  %v676_v11 = vld [vmem:[%s765_s28 + $0x60] sm:$0xff]  ;;  %v677_v15 = vld [vmem:[%s765_s28 + $0x68] sm:$0xff]  ;;  %v678_v19 = vld [vmem:[%s765_s28 + $0x70] sm:$0xff] }
  0x12   : > { %685 = vmatpush.bf16.msra.mxu2 %v378_v3  ;;  %686 = vmatpush.bf16.msra.mxu3 %v378_v3  ;;  %v667_v20 = vld [vmem:[%s765_s28 + $0x18] sm:$0xff] }
  0x13   : > { %v671_v21 = vld [vmem:[%s765_s28 + $0x38] sm:$0xff] }
  0x14   : > { %v675_v22 = vld [vmem:[%s765_s28 + $0x58] sm:$0xff] }
  0x15   : > { %384 = vmatpush.bf16.msra.mxu0 %v683_v4  ;;  %687 = vmatpush.bf16.msra.mxu1 %v683_v4  ;;  %v679_v23 = vld [vmem:[%s765_s28 + $0x78] sm:$0xff] }
  0x16   : > { %688 = vmatpush.bf16.msra.mxu2 %v683_v4  ;;  %689 = vmatpush.bf16.msra.mxu3 %v683_v4 }
  0x19   : > { %385 = vmatpush.bf16.msra.mxu0 %v682_v5  ;;  %690 = vmatpush.bf16.msra.mxu1 %v682_v5 }
  0x1a   : > { %691 = vmatpush.bf16.msra.mxu2 %v682_v5  ;;  %692 = vmatpush.bf16.msra.mxu3 %v682_v5 }
  0x1d   : > { %386 = vmatpush.bf16.msra.mxu0 %v681_v6  ;;  %693 = vmatpush.bf16.msra.mxu1 %v681_v6 }
  0x1e   : > { %694 = vmatpush.bf16.msra.mxu2 %v681_v6  ;;  %695 = vmatpush.bf16.msra.mxu3 %v681_v6 }
  0x21   : > { %387 = vmatpush.bf16.msra.mxu0 %v680_v7  ;;  %696 = vmatpush.bf16.msra.mxu1 %v680_v7 }
  0x22   : > { %697 = vmatpush.bf16.msra.mxu2 %v680_v7  ;;  %698 = vmatpush.bf16.msra.mxu3 %v680_v7 }
  0x24   : > { %646 = vmatmul.msk.bf16.vlgmr.msra.gmra.mxu0 %vm327_vm1, %v664_v8  ;;  %650 = vmatmul.msk.bf16.vlgmr.msra.gmra.mxu1 %vm327_vm1, %v668_v9 }
  0x25   : > { %654 = vmatmul.msk.bf16.vlgmr.msra.gmra.mxu2 %vm327_vm1, %v672_v10  ;;  %658 = vmatmul.msk.bf16.vlgmr.msra.gmra.mxu3 %vm327_vm1, %v676_v11 }
  0x34   : > { %647 = vmatmul.msk.bf16.gmra.mxu0 %vm327_vm1, %v665_v12  ;;  %651 = vmatmul.msk.bf16.gmra.mxu1 %vm327_vm1, %v669_v13 }
  0x35   : > { %655 = vmatmul.msk.bf16.gmra.mxu2 %vm327_vm1, %v673_v14  ;;  %659 = vmatmul.msk.bf16.gmra.mxu3 %vm327_vm1, %v677_v15 }
  0x44   : > { %648 = vmatmul.msk.bf16.gmra.mxu0 %vm327_vm1, %v666_v16  ;;  %652 = vmatmul.msk.bf16.gmra.mxu1 %vm327_vm1, %v670_v17 }
  0x45   : > { %656 = vmatmul.msk.bf16.gmra.mxu2 %vm327_vm1, %v674_v18  ;;  %660 = vmatmul.msk.bf16.gmra.mxu3 %vm327_vm1, %v678_v19 }
  0x54   : > { %649 = vmatmul.msk.bf16.gmra.mxu0 %vm327_vm1, %v667_v20  ;;  %653 = vmatmul.msk.bf16.gmra.mxu1 %vm327_vm1, %v671_v21 }
  0x55   : > { %657 = vmatmul.msk.bf16.gmra.mxu2 %vm327_vm1, %v675_v22  ;;  %661 = vmatmul.msk.bf16.gmra.mxu3 %vm327_vm1, %v679_v23 }
  0xa1   : > { %v389_v25 = vpop.f32.mrf.mxu0  ;;  %v409_v26 = vpop.f32.mrf.mxu1 }
  0xa2   : > { %v390_v27 = vadd.f32 %v803_v24, %v389_v25  ;;  %v410_v28 = vadd.f32 %v803_v24, %v409_v26 }
  0xa4   : > { %469 = vst [vmem:[%s808_s7] sm:$0xff] %v390_v27 }
  0xa5   : > { %477 = vst [vmem:[%s808_s7 + $0x40] sm:$0xff] %v410_v28 }
  0xa8   : > { %v429_v29 = vpop.f32.mrf.mxu2  ;;  %v449_v30 = vpop.f32.mrf.mxu3 }
  0xa9   : > { %v430_v31 = vadd.f32 %v803_v24, %v429_v29  ;;  %v450_v32 = vadd.f32 %v803_v24, %v449_v30  ;;  %v391_v33 = vpop.f32.mrf.mxu0  ;;  %v411_v34 = vpop.f32.mrf.mxu1 }
  0xaa   : > { %v392_v35 = vadd.f32 %v803_v24, %v391_v33  ;;  %v412_v36 = vadd.f32 %v803_v24, %v411_v34 }
  0xab   : > { %485 = vst [vmem:[%s808_s7 + $0x80] sm:$0xff] %v430_v31 }
  0xac   : > { %493 = vst [vmem:[%s808_s7 + $0xc0] sm:$0xff] %v450_v32 }
  0xad   : > { %470 = vst [vmem:[%s808_s7 + $0x8] sm:$0xff] %v392_v35 }
  0xae   : > { %478 = vst [vmem:[%s808_s7 + $0x48] sm:$0xff] %v412_v36 }
  0xb0   : > { %v431_v37 = vpop.f32.mrf.mxu2  ;;  %v451_v38 = vpop.f32.mrf.mxu3 }
  0xb1   : > { %v432_v39 = vadd.f32 %v803_v24, %v431_v37  ;;  %v452_v40 = vadd.f32 %v803_v24, %v451_v38  ;;  %v394_v41 = vpop.f32.mrf.mxu0  ;;  %v414_v42 = vpop.f32.mrf.mxu1 }
  0xb2   : > { %v395_v43 = vadd.f32 %v803_v24, %v394_v41  ;;  %v415_v44 = vadd.f32 %v803_v24, %v414_v42 }
  0xb3   : > { %486 = vst [vmem:[%s808_s7 + $0x88] sm:$0xff] %v432_v39 }
  0xb4   : > { %494 = vst [vmem:[%s808_s7 + $0xc8] sm:$0xff] %v452_v40 }
  0xb5   : > { %471 = vst [vmem:[%s808_s7 + $0x10] sm:$0xff] %v395_v43 }
  0xb6   : > { %479 = vst [vmem:[%s808_s7 + $0x50] sm:$0xff] %v415_v44 }
  0xb8   : > { %v434_v45 = vpop.f32.mrf.mxu2  ;;  %v454_v46 = vpop.f32.mrf.mxu3 }
  0xb9   : > { %v435_v47 = vadd.f32 %v803_v24, %v434_v45  ;;  %v455_v48 = vadd.f32 %v803_v24, %v454_v46  ;;  %v396_v49 = vpop.f32.mrf.mxu0  ;;  %v416_v50 = vpop.f32.mrf.mxu1 }
  0xba   : > { %v397_v51 = vadd.f32 %v803_v24, %v396_v49  ;;  %v417_v52 = vadd.f32 %v803_v24, %v416_v50 }
  0xbb   : > { %487 = vst [vmem:[%s808_s7 + $0x90] sm:$0xff] %v435_v47 }
  0xbc   : > { %495 = vst [vmem:[%s808_s7 + $0xd0] sm:$0xff] %v455_v48 }
  0xbd   : > { %472 = vst [vmem:[%s808_s7 + $0x18] sm:$0xff] %v397_v51 }
  0xbe   : > { %480 = vst [vmem:[%s808_s7 + $0x58] sm:$0xff] %v417_v52 }
  0xc0   : > { %v436_v53 = vpop.f32.mrf.mxu2  ;;  %v456_v54 = vpop.f32.mrf.mxu3 }
  0xc1   : > { %v437_v55 = vadd.f32 %v803_v24, %v436_v53  ;;  %v457_v56 = vadd.f32 %v803_v24, %v456_v54  ;;  %v399_v57 = vpop.f32.mrf.mxu0  ;;  %v419_v58 = vpop.f32.mrf.mxu1 }
  0xc2   : > { %v400_v59 = vadd.f32 %v803_v24, %v399_v57  ;;  %v420_v60 = vadd.f32 %v803_v24, %v419_v58 }
  0xc3   : > { %488 = vst [vmem:[%s808_s7 + $0x98] sm:$0xff] %v437_v55 }
  0xc4   : > { %496 = vst [vmem:[%s808_s7 + $0xd8] sm:$0xff] %v457_v56 }
  0xc5   : > { %473 = vst [vmem:[%s808_s7 + $0x20] sm:$0xff] %v400_v59 }
  0xc6   : > { %481 = vst [vmem:[%s808_s7 + $0x60] sm:$0xff] %v420_v60 }
  0xc8   : > { %v439_v61 = vpop.f32.mrf.mxu2  ;;  %v459_v62 = vpop.f32.mrf.mxu3 }
  0xc9   : > { %v440_v63 = vadd.f32 %v803_v24, %v439_v61  ;;  %v460_v0 = vadd.f32 %v803_v24, %v459_v62  ;;  %v401_v1 = vpop.f32.mrf.mxu0  ;;  %v421_v2 = vpop.f32.mrf.mxu1 }
  0xca   : > { %v402_v3 = vadd.f32 %v803_v24, %v401_v1  ;;  %v422_v4 = vadd.f32 %v803_v24, %v421_v2 }
  0xcb   : > { %489 = vst [vmem:[%s808_s7 + $0xa0] sm:$0xff] %v440_v63 }
  0xcc   : > { %497 = vst [vmem:[%s808_s7 + $0xe0] sm:$0xff] %v460_v0 }
  0xcd   : > { %474 = vst [vmem:[%s808_s7 + $0x28] sm:$0xff] %v402_v3 }
  0xce   : > { %482 = vst [vmem:[%s808_s7 + $0x68] sm:$0xff] %v422_v4 }
  0xd0   : > { %v441_v5 = vpop.f32.mrf.mxu2  ;;  %v461_v6 = vpop.f32.mrf.mxu3 }
  0xd1   : > { %v442_v7 = vadd.f32 %v803_v24, %v441_v5  ;;  %v462_v8 = vadd.f32 %v803_v24, %v461_v6  ;;  %v404_v9 = vpop.f32.mrf.mxu0  ;;  %v424_v10 = vpop.f32.mrf.mxu1 }
  0xd2   : > { %v405_v11 = vadd.f32 %v803_v24, %v404_v9  ;;  %v425_v12 = vadd.f32 %v803_v24, %v424_v10 }
  0xd3   : > { %490 = vst [vmem:[%s808_s7 + $0xa8] sm:$0xff] %v442_v7 }
  0xd4   : > { %498 = vst [vmem:[%s808_s7 + $0xe8] sm:$0xff] %v462_v8 }
  0xd5   : > { %475 = vst [vmem:[%s808_s7 + $0x30] sm:$0xff] %v405_v11 }
  0xd6   : > { %483 = vst [vmem:[%s808_s7 + $0x70] sm:$0xff] %v425_v12 }
  0xd8   : > { %v444_v13 = vpop.f32.mrf.mxu2  ;;  %v464_v14 = vpop.f32.mrf.mxu3 }
  0xd9   : > { %v445_v15 = vadd.f32 %v803_v24, %v444_v13  ;;  %v465_v16 = vadd.f32 %v803_v24, %v464_v14  ;;  %v406_v17 = vpop.f32.mrf.mxu0  ;;  %v426_v18 = vpop.f32.mrf.mxu1 }
  0xda   : > { %v407_v19 = vadd.f32 %v803_v24, %v406_v17  ;;  %v427_v20 = vadd.f32 %v803_v24, %v426_v18 }
  0xdb   : > { %491 = vst [vmem:[%s808_s7 + $0xb0] sm:$0xff] %v445_v15 }
  0xdc   : > { %499 = vst [vmem:[%s808_s7 + $0xf0] sm:$0xff] %v465_v16 }
  0xdd   : > { %476 = vst [vmem:[%s808_s7 + $0x38] sm:$0xff] %v407_v19 }
  0xde   : > { %484 = vst [vmem:[%s808_s7 + $0x78] sm:$0xff] %v427_v20 }
  0xe0   : > { %v446_v21 = vpop.f32.mrf.mxu2  ;;  %v466_v22 = vpop.f32.mrf.mxu3 }
  0xe1   : > { %v447_v23 = vadd.f32 %v803_v24, %v446_v21  ;;  %v467_v25 = vadd.f32 %v803_v24, %v466_v22 }
  0xe3   : > { %492 = vst [vmem:[%s808_s7 + $0xb8] sm:$0xff] %v447_v23 }
  0xe4   : > { %500 = vst [vmem:[%s808_s7 + $0xf8] sm:$0xff] %v467_v25 }
  0xe5 PF: > { %s13_s12 = sadd.s32 1, %s714_s12  }
  0xe6   : > { %p10_p4 = scmp.ge.s32.totalorder %s13_s12, 4  }
  0xe8   :  { %12 = sbr.rel (!%p10_p4) target bundleno = 1 (0x1), region = 62 }

// kernel: stdf_forward.33
= control target key start
LH: loop header
LB: loop body
LE: loop exit
PB: predicated region body
PF: predicated region fallthrough
CT: control target
= control target key end

     0   :  { %s736_s12 = smov 0   ;;  %s871_s0 = inlined_call_operand.vmem [shape: bf16[512,36], index: 0, kind: input, shape index: {}]   ;;  %s872_s1 = inlined_call_operand.vmem [shape: bf16[36,128], index: 1, kind: input, shape index: {}]   ;;  %s873_s2 = inlined_call_operand.vmem [shape: f32[1,128], index: 2, kind: input, shape index: {}]   ;;  %s874_s3 = inlined_call_operand.vmem [shape: f32[512,128], index: 3, kind: output, shape index: {}]  }
   0x1 LB: > { %s573_s13 = sadd.s32 4294967295, %s714_s12   ;;  %p577_p0 = scmp.ge.s32.totalorder %s714_s12, 1  ;;  %s714_s12 = sphi %s736_s12, %s13_s12  }
   0x2   : > { %p138_p1 = scmp.lt.s32.totalorder %s714_s12, 3 }
   0x4   : > { %p139_p2 = pnand %p577_p0, %p138_p1 }
   0x5   : > { %s578_s16 = sshll.u32 (!%p139_p2), %s573_s13, 5 }
   0x6   : > { %142 = sbr.rel (%p139_p2) target bundleno = 223 (0xdf), region = 32  ;;  %p163_p3 = scmp.lt.s32.totalorder (!%p139_p2), %s578_s16, 63 }
   0xb   : > { %v211_v0 = vld [vmem:[%s872_s1 + $0x10] sm:$0x3]  ;;  %vm360_vm0 = vcmask 1041408   ;;  %s876_s16 = smov (!%p163_p3, %s578_s16), 63  ;;  %v689_v4 = vld [vmem:[%s872_s1 + $0x8] sm:$0xff]  ;;  %v688_v5 = vld [vmem:[%s872_s1] sm:$0xff] }
   0xc   : > { %v305_v1 = vunpack.c.l.b16 %v211_v0  ;;  %s579_s19 = sshll.u32 %s876_s16, 2  ;;  %vm311_vm1 = vcmask 293888   ;;  %v796_v22 = vld [vmem:[%s873_s2] ss:$0 sm:$0xff]  ;;  %s581_s27 = sshll.u32 %s876_s16, 3 }
   0xd   : > { %s759_s24 = scalar_lea.vmem %s871_s0, %s579_s19  ;;  %s804_s30 = scalar_lea.vmem %s874_s3, %s581_s27 }
   0xe   : > { %v308_v2 = vpack.c.b16 %v305_v1, %v305_v1  ;;  %v672_v6 = vld [vmem:[%s759_s24] sm:$0xff]  ;;  %v673_v10 = vld [vmem:[%s759_s24 + $0x8] sm:$0xff]  ;;  %v674_v14 = vld [vmem:[%s759_s24 + $0x10] sm:$0xff] }
   0xf   : > { %v676_v7 = vld [vmem:[%s759_s24 + $0x20] sm:$0xff]  ;;  %v677_v11 = vld [vmem:[%s759_s24 + $0x28] sm:$0xff]  ;;  %v678_v15 = vld [vmem:[%s759_s24 + $0x30] sm:$0xff] }
  0x10   : > { %v362_v3 = vsel %vm360_vm0, %v308_v2, 0  ;;  %v680_v8 = vld [vmem:[%s759_s24 + $0x40] sm:$0xff]  ;;  %v681_v12 = vld [vmem:[%s759_s24 + $0x48] sm:$0xff]  ;;  %v682_v16 = vld [vmem:[%s759_s24 + $0x50] sm:$0xff] }
  0x11   : > { %369 = vmatpush.bf16.msra.mxu0 %v362_v3  ;;  %690 = vmatpush.bf16.msra.mxu1 %v362_v3  ;;  %v684_v9 = vld [vmem:[%s759_s24 + $0x60] sm:$0xff]  ;;  %v685_v13 = vld [vmem:[%s759_s24 + $0x68] sm:$0xff]  ;;  %v686_v17 = vld [vmem:[%s759_s24 + $0x70] sm:$0xff] }
  0x12   : > { %691 = vmatpush.bf16.msra.mxu2 %v362_v3  ;;  %692 = vmatpush.bf16.msra.mxu3 %v362_v3  ;;  %v675_v18 = vld [vmem:[%s759_s24 + $0x18] sm:$0xff] }
  0x13   : > { %v679_v19 = vld [vmem:[%s759_s24 + $0x38] sm:$0xff] }
  0x14   : > { %v683_v20 = vld [vmem:[%s759_s24 + $0x58] sm:$0xff] }
  0x15   : > { %370 = vmatpush.bf16.msra.mxu0 %v689_v4  ;;  %693 = vmatpush.bf16.msra.mxu1 %v689_v4  ;;  %v687_v21 = vld [vmem:[%s759_s24 + $0x78] sm:$0xff] }
  0x16   : > { %694 = vmatpush.bf16.msra.mxu2 %v689_v4  ;;  %695 = vmatpush.bf16.msra.mxu3 %v689_v4 }
  0x19   : > { %371 = vmatpush.bf16.msra.mxu0 %v688_v5  ;;  %696 = vmatpush.bf16.msra.mxu1 %v688_v5 }
  0x1a   : > { %697 = vmatpush.bf16.msra.mxu2 %v688_v5  ;;  %698 = vmatpush.bf16.msra.mxu3 %v688_v5 }
  0x1c   : > { %654 = vmatmul.msk.bf16.vlgmr.msra.gmra.mxu0 %vm311_vm1, %v672_v6  ;;  %658 = vmatmul.msk.bf16.vlgmr.msra.gmra.mxu1 %vm311_vm1, %v676_v7 }
  0x1d   : > { %662 = vmatmul.msk.bf16.vlgmr.msra.gmra.mxu2 %vm311_vm1, %v680_v8  ;;  %666 = vmatmul.msk.bf16.vlgmr.msra.gmra.mxu3 %vm311_vm1, %v684_v9 }
  0x2c   : > { %655 = vmatmul.msk.bf16.gmra.mxu0 %vm311_vm1, %v673_v10  ;;  %659 = vmatmul.msk.bf16.gmra.mxu1 %vm311_vm1, %v677_v11 }
  0x2d   : > { %663 = vmatmul.msk.bf16.gmra.mxu2 %vm311_vm1, %v681_v12  ;;  %667 = vmatmul.msk.bf16.gmra.mxu3 %vm311_vm1, %v685_v13 }
  0x3c   : > { %656 = vmatmul.msk.bf16.gmra.mxu0 %vm311_vm1, %v674_v14  ;;  %660 = vmatmul.msk.bf16.gmra.mxu1 %vm311_vm1, %v678_v15 }
  0x3d   : > { %664 = vmatmul.msk.bf16.gmra.mxu2 %vm311_vm1, %v682_v16  ;;  %668 = vmatmul.msk.bf16.gmra.mxu3 %vm311_vm1, %v686_v17 }
  0x4c   : > { %657 = vmatmul.msk.bf16.gmra.mxu0 %vm311_vm1, %v675_v18  ;;  %661 = vmatmul.msk.bf16.gmra.mxu1 %vm311_vm1, %v679_v19 }
  0x4d   : > { %665 = vmatmul.msk.bf16.gmra.mxu2 %vm311_vm1, %v683_v20  ;;  %669 = vmatmul.msk.bf16.gmra.mxu3 %vm311_vm1, %v687_v21 }
  0x99   : > { %v373_v23 = vpop.f32.mrf.mxu0  ;;  %v393_v24 = vpop.f32.mrf.mxu1 }
  0x9a   : > { %v374_v25 = vadd.f32 %v796_v22, %v373_v23  ;;  %v394_v26 = vadd.f32 %v796_v22, %v393_v24 }
  0x9c   : > { %v453_v27 = vmax.f32 %v374_v25, 0.0  ;;  %v461_v28 = vmax.f32 %v394_v26, 0.0 }
  0x9e   : > { %485 = vst [vmem:[%s804_s30] sm:$0xff] %v453_v27 }
  0x9f   : > { %493 = vst [vmem:[%s804_s30 + $0x40] sm:$0xff] %v461_v28 }
  0xa0   : > { %v413_v29 = vpop.f32.mrf.mxu2  ;;  %v433_v30 = vpop.f32.mrf.mxu3 }
  0xa1   : > { %v414_v31 = vadd.f32 %v796_v22, %v413_v29  ;;  %v434_v32 = vadd.f32 %v796_v22, %v433_v30  ;;  %v375_v33 = vpop.f32.mrf.mxu0  ;;  %v395_v34 = vpop.f32.mrf.mxu1 }
  0xa2   : > { %v376_v35 = vadd.f32 %v796_v22, %v375_v33  ;;  %v396_v36 = vadd.f32 %v796_v22, %v395_v34 }
  0xa3   : > { %v469_v37 = vmax.f32 %v414_v31, 0.0  ;;  %v477_v38 = vmax.f32 %v434_v32, 0.0 }
  0xa4   : > { %v454_v39 = vmax.f32 %v376_v35, 0.0  ;;  %v462_v40 = vmax.f32 %v396_v36, 0.0 }
  0xa5   : > { %501 = vst [vmem:[%s804_s30 + $0x80] sm:$0xff] %v469_v37 }
  0xa6   : > { %509 = vst [vmem:[%s804_s30 + $0xc0] sm:$0xff] %v477_v38 }
  0xa7   : > { %486 = vst [vmem:[%s804_s30 + $0x8] sm:$0xff] %v454_v39 }
  0xa8   : > { %494 = vst [vmem:[%s804_s30 + $0x48] sm:$0xff] %v462_v40  ;;  %v415_v41 = vpop.f32.mrf.mxu2  ;;  %v435_v42 = vpop.f32.mrf.mxu3 }
  0xa9   : > { %v416_v43 = vadd.f32 %v796_v22, %v415_v41  ;;  %v436_v44 = vadd.f32 %v796_v22, %v435_v42  ;;  %v378_v45 = vpop.f32.mrf.mxu0  ;;  %v398_v46 = vpop.f32.mrf.mxu1 }
  0xaa   : > { %v379_v47 = vadd.f32 %v796_v22, %v378_v45  ;;  %v399_v48 = vadd.f32 %v796_v22, %v398_v46 }
  0xab   : > { %v470_v49 = vmax.f32 %v416_v43, 0.0  ;;  %v478_v50 = vmax.f32 %v436_v44, 0.0 }
  0xac   : > { %v455_v51 = vmax.f32 %v379_v47, 0.0  ;;  %v463_v52 = vmax.f32 %v399_v48, 0.0 }
  0xad   : > { %502 = vst [vmem:[%s804_s30 + $0x88] sm:$0xff] %v470_v49 }
  0xae   : > { %510 = vst [vmem:[%s804_s30 + $0xc8] sm:$0xff] %v478_v50 }
  0xaf   : > { %487 = vst [vmem:[%s804_s30 + $0x10] sm:$0xff] %v455_v51 }
  0xb0   : > { %495 = vst [vmem:[%s804_s30 + $0x50] sm:$0xff] %v463_v52  ;;  %v418_v53 = vpop.f32.mrf.mxu2  ;;  %v438_v54 = vpop.f32.mrf.mxu3 }
  0xb1   : > { %v419_v55 = vadd.f32 %v796_v22, %v418_v53  ;;  %v439_v56 = vadd.f32 %v796_v22, %v438_v54  ;;  %v380_v57 = vpop.f32.mrf.mxu0  ;;  %v400_v58 = vpop.f32.mrf.mxu1 }
  0xb2   : > { %v381_v59 = vadd.f32 %v796_v22, %v380_v57  ;;  %v401_v60 = vadd.f32 %v796_v22, %v400_v58 }
  0xb3   : > { %v471_v61 = vmax.f32 %v419_v55, 0.0  ;;  %v479_v62 = vmax.f32 %v439_v56, 0.0 }
  0xb4   : > { %v456_v63 = vmax.f32 %v381_v59, 0.0  ;;  %v464_v0 = vmax.f32 %v401_v60, 0.0 }
  0xb5   : > { %503 = vst [vmem:[%s804_s30 + $0x90] sm:$0xff] %v471_v61 }
  0xb6   : > { %511 = vst [vmem:[%s804_s30 + $0xd0] sm:$0xff] %v479_v62 }
  0xb7   : > { %488 = vst [vmem:[%s804_s30 + $0x18] sm:$0xff] %v456_v63 }
  0xb8   : > { %496 = vst [vmem:[%s804_s30 + $0x58] sm:$0xff] %v464_v0  ;;  %v420_v1 = vpop.f32.mrf.mxu2  ;;  %v440_v2 = vpop.f32.mrf.mxu3 }
  0xb9   : > { %v421_v3 = vadd.f32 %v796_v22, %v420_v1  ;;  %v441_v4 = vadd.f32 %v796_v22, %v440_v2  ;;  %v383_v5 = vpop.f32.mrf.mxu0  ;;  %v403_v6 = vpop.f32.mrf.mxu1 }
  0xba   : > { %v384_v7 = vadd.f32 %v796_v22, %v383_v5  ;;  %v404_v8 = vadd.f32 %v796_v22, %v403_v6 }
  0xbb   : > { %v472_v9 = vmax.f32 %v421_v3, 0.0  ;;  %v480_v10 = vmax.f32 %v441_v4, 0.0 }
  0xbc   : > { %v457_v11 = vmax.f32 %v384_v7, 0.0  ;;  %v465_v12 = vmax.f32 %v404_v8, 0.0 }
  0xbd   : > { %504 = vst [vmem:[%s804_s30 + $0x98] sm:$0xff] %v472_v9 }
  0xbe   : > { %512 = vst [vmem:[%s804_s30 + $0xd8] sm:$0xff] %v480_v10 }
  0xbf   : > { %489 = vst [vmem:[%s804_s30 + $0x20] sm:$0xff] %v457_v11 }
  0xc0   : > { %497 = vst [vmem:[%s804_s30 + $0x60] sm:$0xff] %v465_v12  ;;  %v423_v13 = vpop.f32.mrf.mxu2  ;;  %v443_v14 = vpop.f32.mrf.mxu3 }
  0xc1   : > { %v424_v15 = vadd.f32 %v796_v22, %v423_v13  ;;  %v444_v16 = vadd.f32 %v796_v22, %v443_v14  ;;  %v385_v17 = vpop.f32.mrf.mxu0  ;;  %v405_v18 = vpop.f32.mrf.mxu1 }
  0xc2   : > { %v386_v19 = vadd.f32 %v796_v22, %v385_v17  ;;  %v406_v20 = vadd.f32 %v796_v22, %v405_v18 }
  0xc3   : > { %v473_v21 = vmax.f32 %v424_v15, 0.0  ;;  %v481_v23 = vmax.f32 %v444_v16, 0.0 }
  0xc4   : > { %v458_v24 = vmax.f32 %v386_v19, 0.0  ;;  %v466_v25 = vmax.f32 %v406_v20, 0.0 }
  0xc5   : > { %505 = vst [vmem:[%s804_s30 + $0xa0] sm:$0xff] %v473_v21 }
  0xc6   : > { %513 = vst [vmem:[%s804_s30 + $0xe0] sm:$0xff] %v481_v23 }
  0xc7   : > { %490 = vst [vmem:[%s804_s30 + $0x28] sm:$0xff] %v458_v24 }
  0xc8   : > { %498 = vst [vmem:[%s804_s30 + $0x68] sm:$0xff] %v466_v25  ;;  %v425_v26 = vpop.f32.mrf.mxu2  ;;  %v445_v27 = vpop.f32.mrf.mxu3 }
  0xc9   : > { %v426_v28 = vadd.f32 %v796_v22, %v425_v26  ;;  %v446_v29 = vadd.f32 %v796_v22, %v445_v27  ;;  %v388_v30 = vpop.f32.mrf.mxu0  ;;  %v408_v31 = vpop.f32.mrf.mxu1 }
  0xca   : > { %v389_v32 = vadd.f32 %v796_v22, %v388_v30  ;;  %v409_v33 = vadd.f32 %v796_v22, %v408_v31 }
  0xcb   : > { %v474_v34 = vmax.f32 %v426_v28, 0.0  ;;  %v482_v35 = vmax.f32 %v446_v29, 0.0 }
  0xcc   : > { %v459_v36 = vmax.f32 %v389_v32, 0.0  ;;  %v467_v37 = vmax.f32 %v409_v33, 0.0 }
  0xcd   : > { %506 = vst [vmem:[%s804_s30 + $0xa8] sm:$0xff] %v474_v34 }
  0xce   : > { %514 = vst [vmem:[%s804_s30 + $0xe8] sm:$0xff] %v482_v35 }
  0xcf   : > { %491 = vst [vmem:[%s804_s30 + $0x30] sm:$0xff] %v459_v36 }
  0xd0   : > { %499 = vst [vmem:[%s804_s30 + $0x70] sm:$0xff] %v467_v37  ;;  %v428_v38 = vpop.f32.mrf.mxu2  ;;  %v448_v39 = vpop.f32.mrf.mxu3 }
  0xd1   : > { %v429_v40 = vadd.f32 %v796_v22, %v428_v38  ;;  %v449_v41 = vadd.f32 %v796_v22, %v448_v39  ;;  %v390_v42 = vpop.f32.mrf.mxu0  ;;  %v410_v43 = vpop.f32.mrf.mxu1 }
  0xd2   : > { %v391_v44 = vadd.f32 %v796_v22, %v390_v42  ;;  %v411_v45 = vadd.f32 %v796_v22, %v410_v43 }
  0xd3   : > { %v475_v46 = vmax.f32 %v429_v40, 0.0  ;;  %v483_v47 = vmax.f32 %v449_v41, 0.0 }
  0xd4   : > { %v460_v48 = vmax.f32 %v391_v44, 0.0  ;;  %v468_v49 = vmax.f32 %v411_v45, 0.0 }
  0xd5   : > { %507 = vst [vmem:[%s804_s30 + $0xb0] sm:$0xff] %v475_v46 }
  0xd6   : > { %515 = vst [vmem:[%s804_s30 + $0xf0] sm:$0xff] %v483_v47 }
  0xd7   : > { %492 = vst [vmem:[%s804_s30 + $0x38] sm:$0xff] %v460_v48 }
  0xd8   : > { %500 = vst [vmem:[%s804_s30 + $0x78] sm:$0xff] %v468_v49  ;;  %v430_v50 = vpop.f32.mrf.mxu2  ;;  %v450_v51 = vpop.f32.mrf.mxu3 }
  0xd9   : > { %v431_v52 = vadd.f32 %v796_v22, %v430_v50  ;;  %v451_v53 = vadd.f32 %v796_v22, %v450_v51 }
  0xdb   : > { %v476_v54 = vmax.f32 %v431_v52, 0.0  ;;  %v484_v55 = vmax.f32 %v451_v53, 0.0 }
  0xdd   : > { %508 = vst [vmem:[%s804_s30 + $0xb8] sm:$0xff] %v476_v54 }
  0xde   : > { %516 = vst [vmem:[%s804_s30 + $0xf8] sm:$0xff] %v484_v55 }
  0xdf PF: > { %s13_s12 = sadd.s32 1, %s714_s12  }
  0xe0   : > { %p10_p4 = scmp.ge.s32.totalorder %s13_s12, 4  }
  0xe2   :  { %12 = sbr.rel (!%p10_p4) target bundleno = 1 (0x1), region = 62 }

</bundles_post_ra>
